<compile_context>
chip_gen: v7x
topology: tpu7x:2x2x1
jax: 0.10.0
libtpu: 0.0.40
codegen_flags: <defaults>
</compile_context>

<pallas_src>
import functools

import jax
import jax.numpy as jnp
from jax import lax
from jax.experimental import pallas as pl
from jax.experimental.pallas import tpu as pltpu


def _round_up(x, m):
    return ((x + m - 1) // m) * m


def _vmem_capacity_bytes():
    try:
        return int(pltpu.get_tpu_info().vmem_capacity_bytes)
    except Exception:
        return 64 * 1024 * 1024  # conservative default (v7x-sized VMEM)


# ----------------------------- Pallas kernel ------------------------------ #
def vq_kernel(nvalid_ref,                       # SMEM scalar prefetch: (1,) int32
              x_ref, neg2et_ref, e_ref, e2_ref,  # inputs
              q_ref, idx_ref, loss_ref,          # outputs
              *, tile_n):
    x = x_ref[...]                       # (TILE_N, D) f32 instance tile
    neg2et = neg2et_ref[...]             # (D, K_pad)  resident  -2 * E^T (pre-scaled)
    e = e_ref[...]                       # (K_pad, D)  resident codebook (f32)
    e2 = e2_ref[...]                     # (1, K_pad)  |e|^2, padded rows = 1e30 sentinel

    tn = x.shape[0]
    kp = e.shape[0]

    # distances = |x|^2 + |e|^2 - 2 x E^T     (transpose and -2 hoisted to wrapper)
    x2 = jnp.sum(x * x, axis=1, keepdims=True)                        # (TILE_N, 1)
    xe = jnp.dot(x.astype(neg2et.dtype), neg2et,
                 preferred_element_type=jnp.float32)                  # MXU, (TILE_N, K_pad)
    dist = x2 + e2 + xe

    # argmin over codebook axis (first occurrence of the minimum);
    # padded codebook rows lose automatically via the 1e30 sentinel in e2.
    col = lax.broadcasted_iota(jnp.int32, (tn, kp), 1)
    min_d = jnp.min(dist, axis=1, keepdims=True)
    idx = jnp.min(jnp.where(dist <= min_d, col, kp), axis=1)          # (TILE_N,)

    # one-hot encodings -> quantized = encodings @ E  (gather via MXU, kept f32
    # so quantized rows are bit-exact codebook values)
    enc = (col == idx[:, None]).astype(jnp.float32)                   # (TILE_N, K_pad)
    quant = jnp.dot(enc, e, preferred_element_type=jnp.float32)       # (TILE_N, D)

    # straight-through: inputs + (quantized - inputs).detach() == quantized (fwd value)
    q_ref[...] = quant
    idx_ref[...] = idx[None, :].astype(jnp.int32)                     # lane-dense (1, TILE_N)

    # per-tile partial SSE; only tiles that can contain padded rows pay for the mask
    i = pl.program_id(0)
    nvalid = nvalid_ref[0]
    tile_end = (i + 1) * tile_n

    @pl.when(tile_end <= nvalid)
    def _():
        d = quant - x
        loss_ref[...] = jnp.full((1, 128), jnp.sum(d * d), dtype=jnp.float32)

    @pl.when(tile_end > nvalid)
    def _():
        row = i * tile_n + lax.broadcasted_iota(jnp.int32, (tn, 1), 0)
        d = (quant - x) * (row < nvalid).astype(jnp.float32)
        loss_ref[...] = jnp.full((1, 128), jnp.sum(d * d), dtype=jnp.float32)


def vector_quantize(flat_input, codebook, commitment_cost=0.25,
                    tile_n=None, use_bf16_distances=False):
    """Pallas-backed VectorQuantizer.forward. Returns (loss, quantized, indices)."""
    N, D = flat_input.shape
    K, Dk = codebook.shape
    assert D == Dk

    # Codebook rows padded to a full 128-lane MXU result tile.
    K_pad = _round_up(max(K, 1), 128)

    # Bucketed instance padding (power-of-two number of 128-row chunks) so one
    # compiled Mosaic kernel serves all bag sizes within a bucket; the exact N
    # is passed at runtime via scalar prefetch.
    N_bucket = 128 * pl.next_power_of_2(pl.cdiv(max(N, 1), 128))

    vmem_cap = _vmem_capacity_bytes()
    big_vmem = vmem_cap >= 96 * 1024 * 1024          # v5e/v6e (128 MiB); v7x has 64 MiB
    cap = 2048 if (big_vmem and K_pad <= 1024) else 1024

    if tile_n is None:
        if N_bucket <= 128:
            tile_n = 128                              # tiny bag: single tile is unavoidable
        elif N_bucket <= 2 * cap:
            # >=2 tiles so the "parallel" axis can split across v7x's two TensorCores
            tile_n = max(128, _round_up(N_bucket // 2, 128))
        else:
            tile_n = cap
    N_pad = _round_up(N_bucket, tile_n)
    num_tiles = N_pad // tile_n

    x_p = jnp.pad(flat_input.astype(jnp.float32), ((0, N_pad - N), (0, 0)))
    e_p = jnp.pad(codebook.astype(jnp.float32), ((0, K_pad - K), (0, 0)))     # (K_pad, D)

    # Hoisted per-tile work: pre-transposed, pre-scaled codebook and |E|^2 with
    # a large-finite sentinel on padded rows (replaces the in-kernel mask).
    dist_dtype = jnp.bfloat16 if use_bf16_distances else jnp.float32
    neg2et = (-2.0 * e_p).T.astype(dist_dtype)                                # (D, K_pad)
    e2_rows = jnp.sum(e_p * e_p, axis=1)                                      # (K_pad,)
    e2 = jnp.where(jnp.arange(K_pad) >= K, jnp.float32(1e30), e2_rows)[None, :]

    n_valid = jnp.array([N], dtype=jnp.int32)                                 # SMEM prefetch

    kernel = functools.partial(vq_kernel, tile_n=tile_n)

    cost = pl.CostEstimate(
        flops=4 * N_pad * K_pad * D,                                           # two matmuls
        transcendentals=0,
        bytes_accessed=(2 * N_pad * D + 2 * K_pad * D + K_pad + N_pad) * 4,
    )

    # TODO(synk): for very large codebooks (K_pad*D plus the (tile_n, K_pad)
    # dist/enc temporaries approaching ~32-48 MiB) add an inner K grid axis
    # ("arbitrary") with running (min_d, argmin) scratch so v7x's 64 MiB VMEM
    # stays within budget; not needed at the shapes this module uses (K=32).
    grid_spec = pltpu.PrefetchScalarGridSpec(
        num_scalar_prefetch=1,
        grid=(num_tiles,),
        in_specs=[
            pl.BlockSpec((tile_n, D), lambda i, nv: (i, 0)),                  # x tile (pipelined)
            pl.BlockSpec((D, K_pad), lambda i, nv: (0, 0),
                         pipeline_mode=pl.Buffered(1)),                        # -2*E^T resident
            pl.BlockSpec((K_pad, D), lambda i, nv: (0, 0),
                         pipeline_mode=pl.Buffered(1)),                        # E resident
            pl.BlockSpec((1, K_pad), lambda i, nv: (0, 0),
                         pipeline_mode=pl.Buffered(1)),                        # |E|^2 resident
        ],
        out_specs=(
            pl.BlockSpec((tile_n, D), lambda i, nv: (i, 0)),
            pl.BlockSpec((1, tile_n), lambda i, nv: (i, 0)),                  # lane-dense idx
            pl.BlockSpec((1, 128), lambda i, nv: (i, 0)),                     # lane-dense SSE
        ),
    )

    quant, idx, loss_part = pl.pallas_call(
        kernel,
        out_shape=(
            jax.ShapeDtypeStruct((N_pad, D), jnp.float32),                    # quantized
            jax.ShapeDtypeStruct((num_tiles, tile_n), jnp.int32),             # indices
            jax.ShapeDtypeStruct((num_tiles, 128), jnp.float32),              # SSE partials
        ),
        grid_spec=grid_spec,
        compiler_params=pltpu.CompilerParams(
            dimension_semantics=("parallel",),                                # no cross-tile dep
            vmem_limit_bytes=(64 if tile_n >= 2048 else 32) * 1024 * 1024,
        ),
        cost_estimate=cost,
    )(n_valid, x_p, neg2et, e_p, e2)

    # finish the mean in JAX: e_latent_loss == q_latent_loss in forward value
    mse = jnp.sum(loss_part[:, 0]) / float(N * D)
    loss = (1.0 + commitment_cost) * mse
    quantized = quant[:N]
    encodings = idx.reshape(-1)[:N][:, None]                                  # (N, 1) int32
    # TODO(synk): detach/straight-through are gradient-only semantics; wrap the
    # pallas_call in a custom_vjp if training (backward) parity with torch is needed.
    return loss, quantized, encodings


# --------------------------- plain-JAX glue -------------------------------- #
def encoder_fn(x, params):
    # simple instance encoder: Linear(IN_DIM -> D) + ReLU  (user-supplied in torch)
    return jax.nn.relu(x @ params["enc_W"] + params["enc_b"])


def head_fn(x, params):
    # ABMIL-style attention head: returns (logits, A, Z)   (user-supplied in torch)
    h = jnp.tanh(x @ params["attn_V"])                # (N, H)
    a = h @ params["attn_w"]                          # (N, 1)
    A = jax.nn.softmax(a.T, axis=-1)                  # (1, N) attention over instances
    Z = A @ x                                         # (1, D) pooled bag feature
    logits = Z @ params["cls_W"] + params["cls_b"]    # (1, C)
    return logits, A, Z


def vqmil_forward(x, params, commitment_cost=0.25):
    feats = encoder_fn(x, params)                                     # (N, D)
    vq_loss, quantized, encodings = vector_quantize(
        feats, params["codebook"], commitment_cost)                   # Pallas kernel
    logits, A, Z = head_fn(quantized, params)
    return vq_loss, logits, encodings, A, Z


# ------------------------------- main -------------------------------------- #
if __name__ == "__main__":
    N, IN_DIM = 8, 64          # bag of 8 instances
    D = 128                    # embedding_dim (VQ dim)
    K = 32                     # num_embeddings
    H, C = 32, 2               # attention hidden, num classes

    key = jax.random.PRNGKey(0)
    k_x, k_enc, k_cb, k_av, k_aw, k_cls = jax.random.split(key, 6)

    x = jax.random.normal(k_x, (N, IN_DIM), dtype=jnp.float32)

    params = {
        "enc_W": jax.random.normal(k_enc, (IN_DIM, D), dtype=jnp.float32) * 0.05,
        "enc_b": jnp.zeros((D,), dtype=jnp.float32),
        # nn.Embedding weight init: uniform(-1/K, 1/K)
        "codebook": jax.random.uniform(
            k_cb, (K, D), dtype=jnp.float32, minval=-1.0 / K, maxval=1.0 / K),
        "attn_V": jax.random.normal(k_av, (D, H), dtype=jnp.float32) * 0.05,
        "attn_w": jax.random.normal(k_aw, (H, 1), dtype=jnp.float32) * 0.05,
        "cls_W": jax.random.normal(k_cls, (D, C), dtype=jnp.float32) * 0.05,
        "cls_b": jnp.zeros((C,), dtype=jnp.float32),
    }

    vq_loss, logits, encodings, A, Z = jax.jit(vqmil_forward)(x, params)
    jax.block_until_ready((vq_loss, logits, encodings, A, Z))

    assert logits.shape == (1, C)
    assert encodings.shape == (N, 1) and encodings.dtype == jnp.int32
    assert A.shape == (1, N) and Z.shape == (1, D)
    assert bool(jnp.all(encodings >= 0)) and bool(jnp.all(encodings < K))
    assert jnp.isfinite(vq_loss)
    print("KERNEL_OK")
</pallas_src>

<mosaic_0001>
module attributes {stable_mosaic.version = 11 : i64} {
  func.func @vq_kernel(%arg0: i32, %arg1: memref<1xi32, #tpu.memory_space<smem>>, %arg2: memref<128x128xf32, #tpu.memory_space<vmem>>, %arg3: memref<128x128xf32, #tpu.memory_space<vmem>>, %arg4: memref<128x128xf32, #tpu.memory_space<vmem>>, %arg5: memref<1x128xf32, #tpu.memory_space<vmem>>, %arg6: memref<128x128xf32, #tpu.memory_space<vmem>>, %arg7: memref<1x128xi32, #tpu.memory_space<vmem>>, %arg8: memref<1x128xf32, #tpu.memory_space<vmem>>) attributes {dimension_semantics = [#tpu.dimension_semantics<parallel>], iteration_bounds = array<i64: 1>, scalar_prefetch = 1 : i64, scratch_operands = 0 : i64, tpu.core_type = #tpu.core_type<tc>, window_params = [{transform_indices = @transform_0, window_bounds = array<i64: 128, 128>}, {pipeline_mode = #tpu.pipeline_mode<synchronous>, transform_indices = @transform_1, window_bounds = array<i64: 128, 128>}, {pipeline_mode = #tpu.pipeline_mode<synchronous>, transform_indices = @transform_2, window_bounds = array<i64: 128, 128>}, {pipeline_mode = #tpu.pipeline_mode<synchronous>, transform_indices = @transform_3, window_bounds = array<i64: 1, 128>}, {transform_indices = @transform_4, window_bounds = array<i64: 128, 128>}, {transform_indices = @transform_5, window_bounds = array<i64: 1, 128>}, {transform_indices = @transform_6, window_bounds = array<i64: 1, 128>}]} {
    %c0 = arith.constant 0 : index
    %c0_0 = arith.constant 0 : index
    %0 = vector.load %arg2[%c0, %c0_0] : memref<128x128xf32, #tpu.memory_space<vmem>>, vector<128x128xf32>
    %c0_1 = arith.constant 0 : index
    %c0_2 = arith.constant 0 : index
    %1 = vector.load %arg3[%c0_1, %c0_2] : memref<128x128xf32, #tpu.memory_space<vmem>>, vector<128x128xf32>
    %c0_3 = arith.constant 0 : index
    %c0_4 = arith.constant 0 : index
    %2 = vector.load %arg4[%c0_3, %c0_4] : memref<128x128xf32, #tpu.memory_space<vmem>>, vector<128x128xf32>
    %c0_5 = arith.constant 0 : index
    %c0_6 = arith.constant 0 : index
    %3 = vector.load %arg5[%c0_5, %c0_6] : memref<1x128xf32, #tpu.memory_space<vmem>>, vector<1x128xf32>
    %4 = arith.mulf %0, %0 : vector<128x128xf32>
    %cst = arith.constant dense<0.000000e+00> : vector<128xf32>
    %5 = vector.multi_reduction <add>, %4, %cst [1] : vector<128x128xf32> to vector<128xf32>
    %6 = vector.shape_cast %5 : vector<128xf32> to vector<128x1xf32>
    %cst_7 = arith.constant dense<0.000000e+00> : vector<128x128xf32>
    %7 = tpu.matmul %0, %1, %cst_7 {dimension_numbers = #tpu.dot_dimension_numbers<[1], [0], [0], [1], [0, 0, 1, 1], [], []>} : vector<128x128xf32>, vector<128x128xf32>, vector<128x128xf32> -> vector<128x128xf32>
    %8 = vector.broadcast %6 : vector<128x1xf32> to vector<128x128xf32>
    %9 = vector.broadcast %3 : vector<1x128xf32> to vector<128x128xf32>
    %10 = arith.addf %8, %9 : vector<128x128xf32>
    %11 = arith.addf %10, %7 : vector<128x128xf32>
    %12 = tpu.iota {dimensions = array<i32: 1>} : vector<128x128xi32>
    %cst_8 = arith.constant dense<0x7F800000> : vector<128xf32>
    %13 = vector.multi_reduction <minimumf>, %11, %cst_8 [1] : vector<128x128xf32> to vector<128xf32>
    %14 = vector.shape_cast %13 : vector<128xf32> to vector<128x1xf32>
    %15 = vector.broadcast %14 : vector<128x1xf32> to vector<128x128xf32>
    %16 = arith.cmpf ole, %11, %15 : vector<128x128xf32>
    %c128_i32 = arith.constant 128 : i32
    %17 = vector.broadcast %c128_i32 : i32 to vector<128x128xi32>
    %18 = arith.select %16, %12, %17 : vector<128x128xi1>, vector<128x128xi32>
    %cst_9 = arith.constant dense<2147483647> : vector<128xi32>
    %19 = vector.multi_reduction <minsi>, %18, %cst_9 [1] : vector<128x128xi32> to vector<128xi32>
    %20 = vector.shape_cast %19 : vector<128xi32> to vector<128x1xi32>
    %21 = vector.broadcast %20 : vector<128x1xi32> to vector<128x128xi32>
    %22 = arith.cmpi eq, %12, %21 : vector<128x128xi32>
    %23 = arith.extui %22 : vector<128x128xi1> to vector<128x128xi32>
    %24 = arith.sitofp %23 : vector<128x128xi32> to vector<128x128xf32>
    %cst_10 = arith.constant dense<0.000000e+00> : vector<128x128xf32>
    %25 = tpu.matmul %24, %2, %cst_10 {dimension_numbers = #tpu.dot_dimension_numbers<[1], [0], [0], [1], [0, 0, 1, 1], [], []>} : vector<128x128xf32>, vector<128x128xf32>, vector<128x128xf32> -> vector<128x128xf32>
    %c0_11 = arith.constant 0 : index
    %c0_12 = arith.constant 0 : index
    %26 = vector.load %arg6[%c0_11, %c0_12] : memref<128x128xf32, #tpu.memory_space<vmem>>, vector<128x128xf32>
    tpu.vector_store %arg6[%c0_11, %c0_12], %25 {strides = array<i32>} : memref<128x128xf32, #tpu.memory_space<vmem>>, vector<128x128xf32>,
    %27 = vector.shape_cast %19 : vector<128xi32> to vector<1x128xi32>
    %c0_13 = arith.constant 0 : index
    %c0_14 = arith.constant 0 : index
    %28 = vector.load %arg7[%c0_13, %c0_14] : memref<1x128xi32, #tpu.memory_space<vmem>>, vector<1x128xi32>
    tpu.vector_store %arg7[%c0_13, %c0_14], %27 {strides = array<i32>} : memref<1x128xi32, #tpu.memory_space<vmem>>, vector<1x128xi32>,
    %c0_15 = arith.constant 0 : index
    %29 = memref.load %arg1[%c0_15] : memref<1xi32, #tpu.memory_space<smem>>
    %c1_i32 = arith.constant 1 : i32
    %30 = arith.addi %arg0, %c1_i32 : i32
    %c128_i32_16 = arith.constant 128 : i32
    %31 = arith.muli %30, %c128_i32_16 : i32
    %32 = arith.cmpi sle, %31, %29 : i32
    %33 = arith.extui %32 : i1 to i32
    %c0_i32 = arith.constant 0 : i32
    %34 = arith.cmpi ne, %33, %c0_i32 : i32
    scf.if %34 {
      %38 = arith.subf %25, %0 : vector<128x128xf32>
      %39 = arith.mulf %38, %38 : vector<128x128xf32>
      %40 = vector.shape_cast %39 : vector<128x128xf32> to vector<1x128x128xf32>
      %cst_18 = arith.constant dense<0.000000e+00> : vector<1xf32>
      %41 = vector.multi_reduction <add>, %40, %cst_18 [1, 2] : vector<1x128x128xf32> to vector<1xf32>
      %42 = vector.shape_cast %41 : vector<1xf32> to vector<1x1x1xf32>
      %43 = vector.extract %42[0, 0, 0] : f32 from vector<1x1x1xf32>
      %44 = vector.broadcast %43 : f32 to vector<1x128xf32>
      %c0_19 = arith.constant 0 : index
      %c0_20 = arith.constant 0 : index
      %45 = vector.load %arg8[%c0_19, %c0_20] : memref<1x128xf32, #tpu.memory_space<vmem>>, vector<1x128xf32>
      tpu.vector_store %arg8[%c0_19, %c0_20], %44 {strides = array<i32>} : memref<1x128xf32, #tpu.memory_space<vmem>>, vector<1x128xf32>,
    } else {
    }
    %35 = arith.cmpi sgt, %31, %29 : i32
    %36 = arith.extui %35 : i1 to i32
    %c0_i32_17 = arith.constant 0 : i32
    %37 = arith.cmpi ne, %36, %c0_i32_17 : i32
    scf.if %37 {
      %c128_i32_18 = arith.constant 128 : i32
      %38 = arith.muli %arg0, %c128_i32_18 : i32
      %39 = tpu.iota {dimensions = array<i32: 0>} : vector<128x1xi32>
      %40 = vector.broadcast %38 : i32 to vector<128x1xi32>
      %41 = arith.addi %40, %39 : vector<128x1xi32>
      %42 = arith.subf %25, %0 : vector<128x128xf32>
      %43 = vector.broadcast %29 : i32 to vector<128x1xi32>
      %44 = arith.cmpi slt, %41, %43 : vector<128x1xi32>
      %45 = arith.extui %44 : vector<128x1xi1> to vector<128x1xi32>
      %46 = arith.sitofp %45 : vector<128x1xi32> to vector<128x1xf32>
      %47 = vector.broadcast %46 : vector<128x1xf32> to vector<128x128xf32>
      %48 = arith.mulf %42, %47 : vector<128x128xf32>
      %49 = arith.mulf %48, %48 : vector<128x128xf32>
      %50 = vector.shape_cast %49 : vector<128x128xf32> to vector<1x128x128xf32>
      %cst_19 = arith.constant dense<0.000000e+00> : vector<1xf32>
      %51 = vector.multi_reduction <add>, %50, %cst_19 [1, 2] : vector<1x128x128xf32> to vector<1xf32>
      %52 = vector.shape_cast %51 : vector<1xf32> to vector<1x1x1xf32>
      %53 = vector.extract %52[0, 0, 0] : f32 from vector<1x1x1xf32>
      %54 = vector.broadcast %53 : f32 to vector<1x128xf32>
      %c0_20 = arith.constant 0 : index
      %c0_21 = arith.constant 0 : index
      %55 = vector.load %arg8[%c0_20, %c0_21] : memref<1x128xf32, #tpu.memory_space<vmem>>, vector<1x128xf32>
      tpu.vector_store %arg8[%c0_20, %c0_21], %54 {strides = array<i32>} : memref<1x128xf32, #tpu.memory_space<vmem>>, vector<1x128xf32>,
    } else {
    }
    return
  }
  func.func @transform_0(%arg0: i32, %arg1: memref<1xi32, #tpu.memory_space<smem>>) -> (i32, i32) {
    %c0_i32 = arith.constant 0 : i32
    %c0_i32_0 = arith.constant 0 : i32
    return %arg0, %c0_i32 : i32, i32
  }
  func.func @transform_1(%arg0: i32, %arg1: memref<1xi32, #tpu.memory_space<smem>>) -> (i32, i32) {
    %c0_i32 = arith.constant 0 : i32
    %c0_i32_0 = arith.constant 0 : i32
    %c0_i32_1 = arith.constant 0 : i32
    return %c0_i32, %c0_i32_0 : i32, i32
  }
  func.func @transform_2(%arg0: i32, %arg1: memref<1xi32, #tpu.memory_space<smem>>) -> (i32, i32) {
    %c0_i32 = arith.constant 0 : i32
    %c0_i32_0 = arith.constant 0 : i32
    %c0_i32_1 = arith.constant 0 : i32
    return %c0_i32, %c0_i32_0 : i32, i32
  }
  func.func @transform_3(%arg0: i32, %arg1: memref<1xi32, #tpu.memory_space<smem>>) -> (i32, i32) {
    %c0_i32 = arith.constant 0 : i32
    %c0_i32_0 = arith.constant 0 : i32
    %c0_i32_1 = arith.constant 0 : i32
    return %c0_i32, %c0_i32_0 : i32, i32
  }
  func.func @transform_4(%arg0: i32, %arg1: memref<1xi32, #tpu.memory_space<smem>>) -> (i32, i32) {
    %c0_i32 = arith.constant 0 : i32
    %c0_i32_0 = arith.constant 0 : i32
    return %arg0, %c0_i32 : i32, i32
  }
  func.func @transform_5(%arg0: i32, %arg1: memref<1xi32, #tpu.memory_space<smem>>) -> (i32, i32) {
    %c0_i32 = arith.constant 0 : i32
    %c0_i32_0 = arith.constant 0 : i32
    return %arg0, %c0_i32 : i32, i32
  }
  func.func @transform_6(%arg0: i32, %arg1: memref<1xi32, #tpu.memory_space<smem>>) -> (i32, i32) {
    %c0_i32 = arith.constant 0 : i32
    %c0_i32_0 = arith.constant 0 : i32
    return %arg0, %c0_i32 : i32, i32
  }
}

</mosaic_0001>

<bundles_post_ra>
// kernel: vqmil_forward.1
= control target key start
LH: loop header
LB: loop body
LE: loop exit
PB: predicated region body
PF: predicated region fallthrough
CT: control target
= control target key end

     0   :  { %s2344_s0 = inlined_call_operand.<no memory space> [shape: s32[1], index: 0, kind: input, shape index: {}]   ;;  %s2345_s2 = inlined_call_operand.vmem [shape: f32[128,128], index: 2, kind: input, shape index: {}]   ;;  %s2346_s7 = inlined_call_operand.vmem [shape: f32[1,128], index: 7, kind: output, shape index: {2}]   ;;  %s2347_s1 = inlined_call_operand.vmem [shape: f32[128,128], index: 1, kind: input, shape index: {}]   ;;  %s2348_s4 = inlined_call_operand.vmem [shape: f32[1,128], index: 4, kind: input, shape index: {}]   ;;  %s2349_s3 = inlined_call_operand.vmem [shape: f32[128,128], index: 3, kind: input, shape index: {}]   ;;  %s2350_s6 = inlined_call_operand.vmem [shape: s32[1,128], index: 6, kind: output, shape index: {1}]   ;;  %s2351_s5 = inlined_call_operand.vmem [shape: f32[128,128], index: 5, kind: output, shape index: {0}]  }
   0x1   :  { %v38_v0 = vld [vmem:[%s2345_s2] sm:$0xff]  ;;  %v39_v1 = vld [vmem:[%s2345_s2 + $0x8] sm:$0xff]  ;;  %v40_v2 = vld [vmem:[%s2345_s2 + $0x10] sm:$0xff]  ;;  %p1184_p0 = scmp.lt.s32.totalorder %s2344_s0, 128 }
   0x2   :  { %v1379_v3 = vpack.c.bf16 %v39_v1, %v38_v0  ;;  %v41_v4 = vld [vmem:[%s2345_s2 + $0x18] sm:$0xff]  ;;  %v42_v6 = vld [vmem:[%s2345_s2 + $0x20] sm:$0xff]  ;;  %v43_v7 = vld [vmem:[%s2345_s2 + $0x28] sm:$0xff] }
   0x3   :  { %v1383_v5 = vpack.c.bf16 %v41_v4, %v40_v2  ;;  %v1387_v8 = vpack.c.bf16 %v43_v7, %v42_v6  ;;  %v1512_v9 = vld [vmem:[%s2347_s1] sm:$0xff]  ;;  %v44_v10 = vld [vmem:[%s2345_s2 + $0x30] sm:$0xff]  ;;  %v45_v11 = vld [vmem:[%s2345_s2 + $0x38] sm:$0xff] }
   0x4   :  { %1380 = vmatprep.subr.bf16.mxu0 %v1379_v3  ;;  %1299 = vmatprep.mubr.f32.mxu0 %v1512_v9  ;;  %v1524_v12 = vld [vmem:[%s2347_s1 + $0x10] sm:$0xff]  ;;  %v71_v13 = vmul.f32 %v1512_v9, %v1512_v9  ;;  %v1531_v14 = vld [vmem:[%s2347_s1 + $0x8] sm:$0xff]  ;;  %v1538_v16 = vld [vmem:[%s2347_s1 + $0x18] sm:$0xff]  ;;  %v1391_v18 = vpack.c.bf16 %v45_v11, %v44_v10 }
   0x5   :  { %1382 = vmatpush3.bf16.msra.mxu0 %v1379_v3  ;;  %v73_v15 = vmul.f32 %v1524_v12, %v1524_v12  ;;  %v72_v17 = vmul.f32 %v1531_v14, %v1531_v14  ;;  %v74_v19 = vmul.f32 %v1538_v16, %v1538_v16  ;;  %v46_v20 = vld [vmem:[%s2345_s2 + $0x40] sm:$0xff]  ;;  %v47_v21 = vld [vmem:[%s2345_s2 + $0x48] sm:$0xff]  ;;  %v48_v27 = vld [vmem:[%s2345_s2 + $0x50] sm:$0xff] }
   0x6   :  { %1384 = vmatprep.subr.bf16.mxu0 %v1383_v5  ;;  %87 = vadd.xlane.f32.xlu0 %v71_v13  ;;  %v1553_v22 = vld [vmem:[%s2347_s1 + $0x20] sm:$0xff]  ;;  %v1558_v23 = vld [vmem:[%s2347_s1 + $0x28] sm:$0xff]  ;;  %v1395_v25 = vpack.c.bf16 %v47_v21, %v46_v20  ;;  %v49_v28 = vld [vmem:[%s2345_s2 + $0x58] sm:$0xff] }
   0x7   :  { %91 = vadd.xlane.f32.xlu1 %v73_v15  ;;  %v75_v24 = vmul.f32 %v1553_v22, %v1553_v22  ;;  %v76_v26 = vmul.f32 %v1558_v23, %v1558_v23  ;;  %v1573_v29 = vld [vmem:[%s2347_s1 + $0x30] sm:$0xff]  ;;  %v1578_v30 = vld [vmem:[%s2347_s1 + $0x38] sm:$0xff]  ;;  %v1399_v32 = vpack.c.bf16 %v49_v28, %v48_v27  ;;  %v50_v34 = vld [vmem:[%s2345_s2 + $0x60] sm:$0xff] }
   0x8   :  { %v77_v31 = vmul.f32 %v1573_v29, %v1573_v29  ;;  %v78_v33 = vmul.f32 %v1578_v30, %v1578_v30  ;;  %v51_v35 = vld [vmem:[%s2345_s2 + $0x68] sm:$0xff]  ;;  %v1593_v36 = vld [vmem:[%s2347_s1 + $0x40] sm:$0xff]  ;;  %v52_v41 = vld [vmem:[%s2345_s2 + $0x70] sm:$0xff] }
   0x9   :  { %1386 = vmatpush3.bf16.msra.mxu0 %v1383_v5  ;;  %v1598_v37 = vld [vmem:[%s2347_s1 + $0x48] sm:$0xff]  ;;  %v79_v38 = vmul.f32 %v1593_v36, %v1593_v36  ;;  %v1403_v39 = vpack.c.bf16 %v51_v35, %v50_v34  ;;  %v53_v42 = vld [vmem:[%s2345_s2 + $0x78] sm:$0xff]  ;;  %v1613_v43 = vld [vmem:[%s2347_s1 + $0x50] sm:$0xff] }
   0xa   :  { %1388 = vmatprep.subr.bf16.mxu0 %v1387_v8  ;;  %89 = vadd.xlane.f32.xlu0 %v72_v17  ;;  %v80_v40 = vmul.f32 %v1598_v37, %v1598_v37  ;;  %v1618_v44 = vld [vmem:[%s2347_s1 + $0x58] sm:$0xff]  ;;  %v81_v45 = vmul.f32 %v1613_v43, %v1613_v43  ;;  %v1407_v46 = vpack.c.bf16 %v53_v42, %v52_v41  ;;  %v1627_v48 = vld [vmem:[%s2347_s1 + $0x60] sm:$0xff]  ;;  %v1632_v49 = vld [vmem:[%s2347_s1 + $0x68] sm:$0xff] }
   0xb   :  { %93 = vadd.xlane.f32.xlu1 %v74_v19  ;;  %v82_v47 = vmul.f32 %v1618_v44, %v1618_v44  ;;  %v83_v50 = vmul.f32 %v1627_v48, %v1627_v48  ;;  %v84_v51 = vmul.f32 %v1632_v49, %v1632_v49  ;;  %v1641_v52 = vld [vmem:[%s2347_s1 + $0x70] sm:$0xff]  ;;  %v1646_v53 = vld [vmem:[%s2347_s1 + $0x78] sm:$0xff]  ;;  %v1670_v62 = vld [vmem:[%s2348_s4] ss:$0 sm:$0xff] }
   0xc   :  { %v85_v54 = vmul.f32 %v1641_v52, %v1641_v52  ;;  %v86_v55 = vmul.f32 %v1646_v53, %v1646_v53 }
   0xd   :  { %1390 = vmatpush3.bf16.msra.mxu0 %v1387_v8 }
   0xe   :  { %1392 = vmatprep.subr.bf16.mxu0 %v1391_v18  ;;  %95 = vadd.xlane.f32.xlu0 %v75_v24 }
   0xf   :  { %97 = vadd.xlane.f32.xlu1 %v76_v26 }
  0x11   :  { %1394 = vmatpush3.bf16.msra.mxu0 %v1391_v18 }
  0x12   :  { %1396 = vmatprep.subr.bf16.mxu0 %v1395_v25  ;;  %99 = vadd.xlane.f32.xlu0 %v77_v31 }
  0x13   :  { %101 = vadd.xlane.f32.xlu1 %v78_v33 }
  0x15   :  { %1398 = vmatpush3.bf16.msra.mxu0 %v1395_v25 }
  0x16   :  { %1400 = vmatprep.subr.bf16.mxu0 %v1399_v32  ;;  %103 = vadd.xlane.f32.xlu0 %v79_v38 }
  0x17   :  { %105 = vadd.xlane.f32.xlu1 %v80_v40 }
  0x19   :  { %1402 = vmatpush3.bf16.msra.mxu0 %v1399_v32 }
  0x1a   :  { %1404 = vmatprep.subr.bf16.mxu0 %v1403_v39  ;;  %107 = vadd.xlane.f32.xlu0 %v81_v45 }
  0x1b   :  { %109 = vadd.xlane.f32.xlu1 %v82_v47 }
  0x1d   :  { %1406 = vmatpush3.bf16.msra.mxu0 %v1403_v39 }
  0x1e   :  { %1408 = vmatprep.subr.bf16.mxu0 %v1407_v46  ;;  %111 = vadd.xlane.f32.xlu0 %v83_v50 }
  0x1f   :  { %113 = vadd.xlane.f32.xlu1 %v84_v51 }
  0x21   :  { %1410 = vmatpush3.bf16.msra.mxu0 %v1407_v46 }
  0x22   :  { %115 = vadd.xlane.f32.xlu0 %v85_v54 }
  0x23   :  { %117 = vadd.xlane.f32.xlu1 %v86_v55 }
  0x24   :  { %1300 = vmatmul.mubr.f32.vlgmr.msra.gmra.mrb[0].mxu0 %v1531_v14 }
  0x25   :  { %1302 = vmatprep.mubr.f32.mxu0 %v1524_v12 }
  0x28   :  { %1303 = vmatmul.mubr.f32.gmra.mrb[2].mxu0 %v1538_v16 }
  0x29   :  { %1305 = vmatprep.mubr.f32.mxu0 %v1553_v22 }
  0x2c   :  { %1306 = vmatmul.mubr.f32.gmra.mrb[4].mxu0 %v1558_v23 }
  0x2d   :  { %1308 = vmatprep.mubr.f32.mxu0 %v1573_v29 }
  0x30   :  { %1309 = vmatmul.mubr.f32.gmra.mrb[6].mxu0 %v1578_v30 }
  0x31   :  { %1311 = vmatprep.mubr.f32.mxu0 %v1593_v36 }
  0x34   :  { %1312 = vmatmul.mubr.f32.gmra.mrb[8].mxu0 %v1598_v37 }
  0x35   :  { %1314 = vmatprep.mubr.f32.mxu0 %v1613_v43 }
  0x38   :  { %1315 = vmatmul.mubr.f32.gmra.mrb[10].mxu0 %v1618_v44 }
  0x39   :  { %1317 = vmatprep.mubr.f32.mxu0 %v1627_v48 }
  0x3c   :  { %1318 = vmatmul.mubr.f32.gmra.mrb[12].mxu0 %v1632_v49 }
  0x3d   :  { %1320 = vmatprep.mubr.f32.mxu0 %v1641_v52 }
  0x40   :  { %1321 = vmatmul.mubr.f32.gmra.mrb[14].mxu0 %v1646_v53 }
  0x93   :  { %v88_v57 = vpop.xlane.xlu0 %87 }
  0x94   :  { %v92_v56 = vpop.xlane.xlu1 %91  ;;  %v270_v2 = vadd.f32 %v1670_v62, %v88_v57 }
  0x95   :  { %v272_v8 = vadd.f32 %v1670_v62, %v92_v56 }
  0x97   :  { %v90_v59 = vpop.xlane.xlu0 %89 }
  0x98   :  { %v94_v58 = vpop.xlane.xlu1 %93  ;;  %v271_v63 = vadd.f32 %v1670_v62, %v90_v59 }
  0x99   :  { %v273_v6 = vadd.f32 %v1670_v62, %v94_v58 }
  0x9b   :  { %v96_v61 = vpop.xlane.xlu0 %95 }
  0x9c   :  { %v98_v60 = vpop.xlane.xlu1 %97  ;;  %v274_v20 = vadd.f32 %v1670_v62, %v96_v61 }
  0x9d   :  { %v275_v17 = vadd.f32 %v1670_v62, %v98_v60 }
  0x9f   :  { %v100_v1 = vpop.xlane.xlu0 %99 }
  0xa0   :  { %v102_v0 = vpop.xlane.xlu1 %101  ;;  %v276_v28 = vadd.f32 %v1670_v62, %v100_v1 }
  0xa1   :  { %v277_v26 = vadd.f32 %v1670_v62, %v102_v0 }
  0xa3   :  { %v104_v18 = vpop.xlane.xlu0 %103 }
  0xa4   :  { %v106_v11 = vpop.xlane.xlu1 %105  ;;  %v278_v40 = vadd.f32 %v1670_v62, %v104_v18 }
  0xa5   :  { %v279_v38 = vadd.f32 %v1670_v62, %v106_v11 }
  0xa7   :  { %v108_v32 = vpop.xlane.xlu0 %107 }
  0xa8   :  { %v110_v31 = vpop.xlane.xlu1 %109  ;;  %v280_v54 = vadd.f32 %v1670_v62, %v108_v32 }
  0xa9   :  { %v281_v47 = vadd.f32 %v1670_v62, %v110_v31 }
  0xab   :  { %v112_v50 = vpop.xlane.xlu0 %111 }
  0xac   :  { %v114_v42 = vpop.xlane.xlu1 %113  ;;  %v282_v60 = vadd.f32 %v1670_v62, %v112_v50 }
  0xad   :  { %v283_v58 = vadd.f32 %v1670_v62, %v114_v42 }
  0xb0   :  { %v118_v61 = vpop.xlane.xlu1 %117 }
  0xf7   :  { %v1301_v3 = vpop.f32.mrb[0].mxu0 }
  0xf8   :  { %v1674_v4 = vadd.f32 %v1301_v3, %v271_v63  ;;  %v185_v5 = vpop.f32.mrb[1].mxu0  ;;  %v116_v63 = vpop.xlane.xlu0 %115  ;;  %v285_v3 = vadd.f32 %v1670_v62, %v118_v61 }
  0xf9   :  { %v1677_v7 = vadd.f32 %v270_v2, %v185_v5 }
  0xfa   :  { %306 = vmin.xlane.f32.xlu1 %v1674_v4 }
  0xfb   :  { %v1304_v10 = vpop.f32.mrb[2].mxu0  ;;  %304 = vmin.xlane.f32.xlu0 %v1677_v7 }
  0xfc   :  { %v1682_v13 = vadd.f32 %v1304_v10, %v273_v6  ;;  %v195_v15 = vpop.f32.mrb[3].mxu0  ;;  %v284_v6 = vadd.f32 %v1670_v62, %v116_v63 }
  0xfd   :  { %v1685_v19 = vadd.f32 %v272_v8, %v195_v15 }
  0xfe   :  { %310 = vmin.xlane.f32.xlu1 %v1682_v13 }
  0xff   :  { %v1307_v21 = vpop.f32.mrb[4].mxu0  ;;  %308 = vmin.xlane.f32.xlu0 %v1685_v19 }
 0x100   :  { %v1690_v24 = vadd.f32 %v1307_v21, %v275_v17  ;;  %v205_v25 = vpop.f32.mrb[5].mxu0  ;;  %v302_v17 = vlaneseq }
 0x101   :  { %v1693_v27 = vadd.f32 %v274_v20, %v205_v25 }
 0x102   :  { %314 = vmin.xlane.f32.xlu1 %v1690_v24  ;;  %v1737_v18 = vand.u32 127, %v302_v17 }
 0x103   :  { %v1310_v33 = vpop.f32.mrb[6].mxu0  ;;  %312 = vmin.xlane.f32.xlu0 %v1693_v27 }
 0x104   :  { %v1698_v34 = vadd.f32 %v1310_v33, %v277_v26  ;;  %v215_v35 = vpop.f32.mrb[7].mxu0 }
 0x105   :  { %v1701_v39 = vadd.f32 %v276_v28, %v215_v35 }
 0x106   :  { %318 = vmin.xlane.f32.xlu1 %v1698_v34 }
 0x107   :  { %v1313_v41 = vpop.f32.mrb[8].mxu0  ;;  %316 = vmin.xlane.f32.xlu0 %v1701_v39 }
 0x108   :  { %v1706_v45 = vadd.f32 %v1313_v41, %v279_v38  ;;  %v225_v46 = vpop.f32.mrb[9].mxu0 }
 0x109   :  { %v1709_v51 = vadd.f32 %v278_v40, %v225_v46 }
 0x10a   :  { %322 = vmin.xlane.f32.xlu1 %v1706_v45 }
 0x10b   :  { %v1316_v55 = vpop.f32.mrb[10].mxu0  ;;  %320 = vmin.xlane.f32.xlu0 %v1709_v51 }
 0x10c   :  { %v1714_v56 = vadd.f32 %v1316_v55, %v281_v47  ;;  %v235_v57 = vpop.f32.mrb[11].mxu0 }
 0x10d   :  { %v1717_v59 = vadd.f32 %v280_v54, %v235_v57 }
 0x10e   :  { %326 = vmin.xlane.f32.xlu1 %v1714_v56 }
 0x10f   :  { %v1319_v0 = vpop.f32.mrb[12].mxu0  ;;  %324 = vmin.xlane.f32.xlu0 %v1717_v59 }
 0x110   :  { %v1722_v1 = vadd.f32 %v1319_v0, %v283_v58  ;;  %v245_v2 = vpop.f32.mrb[13].mxu0 }
 0x111   :  { %v1725_v5 = vadd.f32 %v282_v60, %v245_v2 }
 0x112   :  { %330 = vmin.xlane.f32.xlu1 %v1722_v1 }
 0x113   :  { %v1322_v8 = vpop.f32.mrb[14].mxu0  ;;  %328 = vmin.xlane.f32.xlu0 %v1725_v5 }
 0x114   :  { %v1730_v10 = vadd.f32 %v1322_v8, %v285_v3  ;;  %v255_v11 = vpop.f32.mrb[15].mxu0 }
 0x115   :  { %v1732_v15 = vadd.f32 %v284_v6, %v255_v11 }
 0x116   :  { %334 = vmin.xlane.f32.xlu1 %v1730_v10 }
 0x117   :  { %332 = vmin.xlane.f32.xlu0 %v1732_v15 }
 0x187   :  { %v307_v20 = vpop.xlane.xlu1 %306 }
 0x188   :  { %vm337_vm0 = vcmp.le.f32.partialorder %v1674_v4, %v307_v20  ;;  %v305_v62 = vpop.xlane.xlu0 %304 }
 0x189   :  { %v1741_v21 = vsel %vm337_vm0, %v1737_v18, 128  ;;  %vm336_vm1 = vcmp.le.f32.partialorder %v1677_v7, %v305_v62 }
 0x18a   :  { %v1745_v25 = vsel %vm336_vm1, %v1737_v18, 128  ;;  %v383_v26 = vshra.s32 %v1741_v21, 16 }
 0x18b   :  { %v311_v28 = vpop.xlane.xlu1 %310  ;;  %v369_v31 = vshra.s32 %v1745_v25, 16 }
 0x18c   :  { %vm339_vm2 = vcmp.le.f32.partialorder %v1682_v13, %v311_v28  ;;  %v309_v32 = vpop.xlane.xlu0 %308  ;;  %v1750_v33 = vcvt.s32.f32 %v383_v26 }
 0x18d   :  { %v1753_v4 = vsel %vm339_vm2, %v1737_v18, 128  ;;  %vm338_vm3 = vcmp.le.f32.partialorder %v1685_v19, %v309_v32  ;;  %v1756_v35 = vcvt.s32.f32 %v369_v31 }
 0x18e   :  { %v1759_v7 = vsel %vm338_vm3, %v1737_v18, 128  ;;  %386 = vmin.xlane.f32.xlu1 %v1750_v33  ;;  %v411_v38 = vshra.s32 %v1753_v4, 16 }
 0x18f   :  { %v315_v40 = vpop.xlane.xlu1 %314  ;;  %372 = vmin.xlane.f32.xlu0 %v1756_v35  ;;  %v397_v13 = vshra.s32 %v1759_v7, 16 }
 0x190   :  { %vm341_vm4 = vcmp.le.f32.partialorder %v1690_v24, %v315_v40  ;;  %v313_v41 = vpop.xlane.xlu0 %312  ;;  %v1766_v42 = vcvt.s32.f32 %v411_v38 }
 0x191   :  { %v1769_v19 = vsel %vm341_vm4, %v1737_v18, 128  ;;  %vm340_vm5 = vcmp.le.f32.partialorder %v1693_v27, %v313_v41  ;;  %v1772_v46 = vcvt.s32.f32 %v397_v13 }
 0x192   :  { %v1775_v47 = vsel %vm340_vm5, %v1737_v18, 128  ;;  %414 = vmin.xlane.f32.xlu1 %v1766_v42  ;;  %v439_v50 = vshra.s32 %v1769_v19, 16 }
 0x193   :  { %v319_v54 = vpop.xlane.xlu1 %318  ;;  %400 = vmin.xlane.f32.xlu0 %v1772_v46  ;;  %v425_v24 = vshra.s32 %v1775_v47, 16 }
 0x194   :  { %vm343_vm6 = vcmp.le.f32.partialorder %v1698_v34, %v319_v54  ;;  %v317_v55 = vpop.xlane.xlu0 %316  ;;  %v1782_v57 = vcvt.s32.f32 %v439_v50 }
 0x195   :  { %v1785_v27 = vsel %vm343_vm6, %v1737_v18, 128  ;;  %vm342_vm7 = vcmp.le.f32.partialorder %v1701_v39, %v317_v55  ;;  %v1788_v58 = vcvt.s32.f32 %v425_v24 }
 0x196   :  { %v1791_v60 = vsel %vm342_vm7, %v1737_v18, 128  ;;  %442 = vmin.xlane.f32.xlu1 %v1782_v57  ;;  %v467_v61 = vshra.s32 %v1785_v27, 16 }
 0x197   :  { %v323_v63 = vpop.xlane.xlu1 %322  ;;  %428 = vmin.xlane.f32.xlu0 %v1788_v58  ;;  %v453_v34 = vshra.s32 %v1791_v60, 16 }
 0x198   :  { %vm345_vm8 = vcmp.le.f32.partialorder %v1706_v45, %v323_v63  ;;  %v321_v0 = vpop.xlane.xlu0 %320  ;;  %v1798_v2 = vcvt.s32.f32 %v467_v61 }
 0x199   :  { %v1801_v39 = vsel %vm345_vm8, %v1737_v18, 128  ;;  %vm344_vm9 = vcmp.le.f32.partialorder %v1709_v51, %v321_v0  ;;  %v1804_v3 = vcvt.s32.f32 %v453_v34 }
 0x19a   :  { %v1807_v6 = vsel %vm344_vm9, %v1737_v18, 128  ;;  %470 = vmin.xlane.f32.xlu1 %v1798_v2  ;;  %v495_v8 = vshra.s32 %v1801_v39, 16 }
 0x19b   :  { %v327_v11 = vpop.xlane.xlu1 %326  ;;  %456 = vmin.xlane.f32.xlu0 %v1804_v3  ;;  %v481_v45 = vshra.s32 %v1807_v6, 16 }
 0x19c   :  { %vm347_vm10 = vcmp.le.f32.partialorder %v1714_v56, %v327_v11  ;;  %v325_v20 = vpop.xlane.xlu0 %324  ;;  %v1814_v62 = vcvt.s32.f32 %v495_v8  ;;  %v55_v11 = vld [vmem:[%s2349_s3 + $0x8] sm:$0xff] }
 0x19d   :  { %v1817_v51 = vsel %vm347_vm10, %v1737_v18, 128  ;;  %vm346_vm11 = vcmp.le.f32.partialorder %v1717_v59, %v325_v20  ;;  %v1820_v26 = vcvt.s32.f32 %v481_v45  ;;  %v56_v45 = vld [vmem:[%s2349_s3 + $0x10] sm:$0xff] }
 0x19e   :  { %v1823_v28 = vsel %vm346_vm11, %v1737_v18, 128  ;;  %498 = vmin.xlane.f32.xlu1 %v1814_v62  ;;  %v523_v31 = vshra.s32 %v1817_v51, 16 }
 0x19f   :  { %v331_v32 = vpop.xlane.xlu1 %330  ;;  %484 = vmin.xlane.f32.xlu0 %v1820_v26  ;;  %v509_v56 = vshra.s32 %v1823_v28, 16 }
 0x1a0   :  { %vm349_vm12 = vcmp.le.f32.partialorder %v1722_v1, %v331_v32  ;;  %v329_v38 = vpop.xlane.xlu0 %328  ;;  %v1830_v40 = vcvt.s32.f32 %v523_v31  ;;  %v57_v31 = vld [vmem:[%s2349_s3 + $0x18] sm:$0xff] }
 0x1a1   :  { %v1833_v59 = vsel %vm349_vm12, %v1737_v18, 128  ;;  %vm348_vm13 = vcmp.le.f32.partialorder %v1725_v5, %v329_v38  ;;  %v1836_v13 = vcvt.s32.f32 %v509_v56  ;;  %v1415_v32 = vpack.c.bf16 %v57_v31, %v56_v45  ;;  %v58_v56 = vld [vmem:[%s2349_s3 + $0x20] sm:$0xff]  ;;  %v59_v38 = vld [vmem:[%s2349_s3 + $0x28] sm:$0xff]  ;;  %v65_v45 = vld [vmem:[%s2349_s3 + $0x58] sm:$0xff] }
 0x1a2   :  { %v1839_v41 = vsel %vm348_vm13, %v1737_v18, 128  ;;  %526 = vmin.xlane.f32.xlu1 %v1830_v40  ;;  %v551_v50 = vshra.s32 %v1833_v59, 16  ;;  %v66_v31 = vld [vmem:[%s2349_s3 + $0x60] sm:$0xff] }
 0x1a3   :  { %v335_v54 = vpop.xlane.xlu1 %334  ;;  %512 = vmin.xlane.f32.xlu0 %v1836_v13  ;;  %v537_v1 = vshra.s32 %v1839_v41, 16 }
 0x1a4   :  { %vm351_vm14 = vcmp.le.f32.partialorder %v1730_v10, %v335_v54  ;;  %v333_v24 = vpop.xlane.xlu0 %332  ;;  %v1846_v55 = vcvt.s32.f32 %v551_v50  ;;  %v1419_v50 = vpack.c.bf16 %v59_v38, %v58_v56  ;;  %v60_v54 = vld [vmem:[%s2349_s3 + $0x30] sm:$0xff]  ;;  %v382_v38 = vand.u32 65535, %v1741_v21 }
 0x1a5   :  { %v1849_v5 = vsel %vm351_vm14, %v1737_v18, 128  ;;  %vm350_vm15 = vcmp.le.f32.partialorder %v1732_v15, %v333_v24  ;;  %v1852_v61 = vcvt.s32.f32 %v537_v1  ;;  %v54_v15 = vld [vmem:[%s2349_s3] sm:$0xff]  ;;  %v61_v1 = vld [vmem:[%s2349_s3 + $0x38] sm:$0xff] }
 0x1a6   :  { %v1855_v63 = vsel %vm350_vm15, %v1737_v18, 128  ;;  %554 = vmin.xlane.f32.xlu1 %v1846_v55  ;;  %v579_v34 = vshra.s32 %v1849_v5, 16  ;;  %v1411_v20 = vpack.c.bf16 %v55_v11, %v54_v15  ;;  %v1423_v24 = vpack.c.bf16 %v61_v1, %v60_v54  ;;  %v64_v11 = vld [vmem:[%s2349_s3 + $0x50] sm:$0xff] }
 0x1a7   :  { %540 = vmin.xlane.f32.xlu0 %v1852_v61  ;;  %v565_v10 = vshra.s32 %v1855_v63, 16  ;;  %v410_v54 = vand.u32 65535, %v1753_v4 }
 0x1a8   :  { %v1861_v0 = vcvt.s32.f32 %v579_v34  ;;  %1412 = vmatprep.subr.bf16.mxu1 %v1411_v20  ;;  %v62_v34 = vld [vmem:[%s2349_s3 + $0x40] sm:$0xff] }
 0x1a9   :  { %v1863_v8 = vcvt.s32.f32 %v565_v10  ;;  %1414 = vmatpush3.bf16.msra.mxu1 %v1411_v20  ;;  %v63_v10 = vld [vmem:[%s2349_s3 + $0x48] sm:$0xff]  ;;  %v1431_v20 = vpack.c.bf16 %v65_v45, %v64_v11  ;;  %v412_v45 = vcvt.s32.f32 %v410_v54 }
 0x1aa   :  { %582 = vmin.xlane.f32.xlu1 %v1861_v0  ;;  %1416 = vmatprep.subr.bf16.mxu1 %v1415_v32  ;;  %v1427_v15 = vpack.c.bf16 %v63_v10, %v62_v34  ;;  %v396_v34 = vand.u32 65535, %v1759_v7  ;;  %v424_v7 = vand.u32 65535, %v1775_v47  ;;  %v452_v47 = vand.u32 65535, %v1791_v60 }
 0x1ab   :  { %568 = vmin.xlane.f32.xlu0 %v1863_v8  ;;  %v480_v60 = vand.u32 65535, %v1807_v6  ;;  %v508_v6 = vand.u32 65535, %v1823_v28 }
 0x1ad   :  { %1418 = vmatpush3.bf16.msra.mxu1 %v1415_v32  ;;  %v67_v32 = vld [vmem:[%s2349_s3 + $0x68] sm:$0xff] }
 0x1ae   :  { %1420 = vmatprep.subr.bf16.mxu1 %v1419_v50  ;;  %v1435_v56 = vpack.c.bf16 %v67_v32, %v66_v31 }
 0x1b1   :  { %1422 = vmatpush3.bf16.msra.mxu1 %v1419_v50  ;;  %v368_v50 = vand.u32 65535, %v1745_v25  ;;  %v438_v25 = vand.u32 65535, %v1769_v19  ;;  %v466_v19 = vand.u32 65535, %v1785_v27  ;;  %v494_v27 = vand.u32 65535, %v1801_v39 }
 0x1b2   :  { %1424 = vmatprep.subr.bf16.mxu1 %v1423_v24  ;;  %v522_v39 = vand.u32 65535, %v1817_v51  ;;  %v69_v51 = vld [vmem:[%s2349_s3 + $0x78] sm:$0xff] }
 0x1b5   :  { %1426 = vmatpush3.bf16.msra.mxu1 %v1423_v24  ;;  %v384_v24 = vcvt.s32.f32 %v382_v38 }
 0x1b6   :  { %1428 = vmatprep.subr.bf16.mxu1 %v1427_v15 }
 0x1b9   :  { %1430 = vmatpush3.bf16.msra.mxu1 %v1427_v15  ;;  %v370_v15 = vcvt.s32.f32 %v368_v50 }
 0x1ba   :  { %1432 = vmatprep.subr.bf16.mxu1 %v1431_v20 }
 0x1bd   :  { %1434 = vmatpush3.bf16.msra.mxu1 %v1431_v20 }
 0x1be   :  { %1436 = vmatprep.subr.bf16.mxu1 %v1435_v56 }
 0x1c1   :  { %1438 = vmatpush3.bf16.msra.mxu1 %v1435_v56  ;;  %v440_v56 = vcvt.s32.f32 %v438_v25 }
 0x21b   :  { %v1912_v1 = vpop.xlane.xlu1 %386 }
 0x21c   :  { %v1915_v10 = vpop.xlane.xlu0 %372  ;;  %vm388_vm0 = vcmp.eq.f32.partialorder %v1750_v33, %v1912_v1  ;;  %v398_v33 = vcvt.s32.f32 %v396_v34 }
 0x21d   :  { %v389_v11 = vsel %vm388_vm0, %v384_v24, inf  ;;  %vm374_vm1 = vcmp.eq.f32.partialorder %v1756_v35, %v1915_v10  ;;  %v468_v24 = vcvt.s32.f32 %v466_v19  ;;  %vm810_vm0 = vcmask 130112  }
 0x21e   :  { %390 = vmin.xlane.f32.xlu1 %v389_v11  ;;  %v375_v21 = vsel %vm374_vm1, %v370_v15, inf }
 0x21f   :  { %v1922_v4 = vpop.xlane.xlu1 %414  ;;  %376 = vmin.xlane.f32.xlu0 %v375_v21  ;;  %v496_v21 = vcvt.s32.f32 %v494_v27 }
 0x220   :  { %v1925_v20 = vpop.xlane.xlu0 %400  ;;  %vm416_vm2 = vcmp.eq.f32.partialorder %v1766_v42, %v1922_v4  ;;  %v426_v42 = vcvt.s32.f32 %v424_v7 }
 0x221   :  { %v417_v31 = vsel %vm416_vm2, %v412_v45, inf  ;;  %vm402_vm3 = vcmp.eq.f32.partialorder %v1772_v46, %v1925_v20  ;;  %vm817_vm2 = vcmask 195712  }
 0x222   :  { %418 = vmin.xlane.f32.xlu1 %v417_v31  ;;  %v403_v35 = vsel %vm402_vm3, %v398_v33, inf  ;;  %v550_v33 = vand.u32 65535, %v1833_v59 }
 0x223   :  { %v1932_v32 = vpop.xlane.xlu1 %442  ;;  %404 = vmin.xlane.f32.xlu0 %v403_v35  ;;  %v536_v35 = vand.u32 65535, %v1839_v41  ;;  %v564_v41 = vand.u32 65535, %v1855_v63 }
 0x224   :  { %v1935_v38 = vpop.xlane.xlu0 %428  ;;  %vm444_vm4 = vcmp.eq.f32.partialorder %v1782_v57, %v1932_v32  ;;  %v454_v57 = vcvt.s32.f32 %v452_v47  ;;  %v578_v47 = vand.u32 65535, %v1849_v5 }
 0x225   :  { %v445_v50 = vsel %vm444_vm4, %v440_v56, inf  ;;  %vm430_vm5 = vcmp.eq.f32.partialorder %v1788_v58, %v1935_v38  ;;  %v510_v56 = vcvt.s32.f32 %v508_v6  ;;  %v566_v63 = vcvt.s32.f32 %v564_v41 }
 0x226   :  { %446 = vmin.xlane.f32.xlu1 %v445_v50  ;;  %v431_v46 = vsel %vm430_vm5, %v426_v42, inf  ;;  %v552_v50 = vcvt.s32.f32 %v550_v33  ;;  %v580_v5 = vcvt.s32.f32 %v578_v47  ;;  %v449_v6 = vcvt.f32.s32 %v1932_v32 }
 0x227   :  { %v1942_v54 = vpop.xlane.xlu1 %470  ;;  %432 = vmin.xlane.f32.xlu0 %v431_v46  ;;  %vm824_vm4 = vcmask 261312   ;;  %vm831_vm5 = vcmask 326912  }
 0x228   :  { %v1945_v34 = vpop.xlane.xlu0 %456  ;;  %vm472_vm6 = vcmp.eq.f32.partialorder %v1798_v2, %v1942_v54  ;;  %v482_v2 = vcvt.s32.f32 %v480_v60 }
 0x229   :  { %v473_v15 = vsel %vm472_vm6, %v468_v24, inf  ;;  %vm458_vm7 = vcmp.eq.f32.partialorder %v1804_v3, %v1945_v34  ;;  %v68_v3 = vld [vmem:[%s2349_s3 + $0x70] sm:$0xff] }
 0x22a   :  { %474 = vmin.xlane.f32.xlu1 %v473_v15  ;;  %v459_v58 = vsel %vm458_vm7, %v454_v57, inf  ;;  %v1439_v7 = vpack.c.bf16 %v69_v51, %v68_v3  ;;  %v1997_v15 = vshrl.u32 %v302_v17, 7  ;;  %v463_v3 = vcvt.f32.s32 %v1945_v34 }
 0x22b   :  { %v1952_v11 = vpop.xlane.xlu1 %498  ;;  %460 = vmin.xlane.f32.xlu0 %v459_v58  ;;  %v805_v58 = vadd.s32 4294967288, %v1737_v18 }
 0x22c   :  { %v1955_v25 = vpop.xlane.xlu0 %484  ;;  %vm500_vm8 = vcmp.eq.f32.partialorder %v1814_v62, %v1952_v11  ;;  %v524_v62 = vcvt.s32.f32 %v522_v39  ;;  %1440 = vmatprep.subr.bf16.mxu1 %v1439_v7  ;;  %v379_v39 = vcvt.f32.s32 %v1915_v10 }
 0x22d   :  { %v501_v45 = vsel %vm500_vm8, %v496_v21, inf  ;;  %vm486_vm9 = vcmp.eq.f32.partialorder %v1820_v26, %v1955_v25  ;;  %1442 = vmatpush3.bf16.msra.mxu1 %v1439_v7  ;;  %v421_v21 = vcvt.f32.s32 %v1922_v4  ;;  %v491_v17 = vcvt.f32.s32 %v1955_v25 }
 0x22e   :  { %502 = vmin.xlane.f32.xlu1 %v501_v45  ;;  %v487_v28 = vsel %vm486_vm9, %v482_v2, inf  ;;  %v477_v2 = vcvt.f32.s32 %v1942_v54  ;;  %v808_v10 = vsub.s32 %v805_v58, %v1997_v15  ;;  %v819_v4 = vadd.s32 4294967272, %v1737_v18 }
 0x22f   :  { %v1968_v31 = vpop.xlane.xlu1 %526  ;;  %488 = vmin.xlane.f32.xlu0 %v487_v28  ;;  %v422_v7 = vshll.u32 %v421_v21, 16  ;;  %v450_v28 = vshll.u32 %v449_v6, 16  ;;  %v2016_v25 = vshll.u32 %v463_v3, 16  ;;  %vm838_vm8 = vcmask 392512  }
 0x230   :  { %v1971_v19 = vpop.xlane.xlu0 %512  ;;  %vm528_vm10 = vcmp.eq.f32.partialorder %v1830_v40, %v1968_v31  ;;  %v538_v40 = vcvt.s32.f32 %v536_v35  ;;  %v533_v45 = vcvt.f32.s32 %v1968_v31  ;;  %v2012_v33 = vshll.u32 %v477_v2, 16 }
 0x231   :  { %v529_v26 = vsel %vm528_vm10, %v524_v62, inf  ;;  %vm514_vm11 = vcmp.eq.f32.partialorder %v1836_v13, %v1971_v19  ;;  %v519_v54 = vcvt.f32.s32 %v1971_v19  ;;  %v2020_v31 = vshll.u32 %v491_v17, 16 }
 0x232   :  { %530 = vmin.xlane.f32.xlu1 %v529_v26  ;;  %v515_v59 = vsel %vm514_vm11, %v510_v56, inf  ;;  %v2022_v26 = vshll.u32 %v533_v45, 16  ;;  %v822_v47 = vsub.s32 %v819_v4, %v1997_v15  ;;  %vm845_vm11 = vcmask 458112  }
 0x233   :  { %v1978_v42 = vpop.xlane.xlu1 %554  ;;  %516 = vmin.xlane.f32.xlu0 %v515_v59 }
 0x234   :  { %v1981_v46 = vpop.xlane.xlu0 %540  ;;  %vm556_vm12 = vcmp.eq.f32.partialorder %v1846_v55, %v1978_v42  ;;  %v561_v19 = vcvt.f32.s32 %v1978_v42 }
 0x235   :  { %v557_v27 = vsel %vm556_vm12, %v552_v50, inf  ;;  %vm542_vm13 = vcmp.eq.f32.partialorder %v1852_v61, %v1981_v46  ;;  %v393_v61 = vcvt.f32.s32 %v1912_v1  ;;  %v505_v1 = vcvt.f32.s32 %v1952_v11 }
 0x236   :  { %558 = vmin.xlane.f32.xlu1 %v557_v27  ;;  %v543_v13 = vsel %vm542_vm13, %v538_v40, inf  ;;  %v812_v11 = vadd.s32 4294967280, %v1737_v18  ;;  %v803_v50 = vsub.s32 %v1737_v18, %v1997_v15  ;;  %v833_v40 = vadd.s32 4294967256, %v1737_v18 }
 0x237   :  { %v1987_v24 = vpop.xlane.xlu1 %582  ;;  %544 = vmin.xlane.f32.xlu0 %v543_v13  ;;  %v394_v51 = vshll.u32 %v393_v61, 16  ;;  %v2018_v62 = vshll.u32 %v505_v1, 16  ;;  %v2029_v27 = vshll.u32 %v519_v54, 16  ;;  %v547_v13 = vcvt.f32.s32 %v1981_v46 }
 0x238   :  { %v1989_v60 = vpop.xlane.xlu0 %568  ;;  %vm584_vm14 = vcmp.eq.f32.partialorder %v1861_v0, %v1987_v24  ;;  %v407_v0 = vcvt.f32.s32 %v1925_v20  ;;  %v380_v20 = vshll.u32 %v379_v39, 16  ;;  %v826_v39 = vadd.s32 4294967264, %v1737_v18 }
 0x239   :  { %v585_v57 = vsel %vm584_vm14, %v580_v5, inf  ;;  %vm570_vm15 = vcmp.eq.f32.partialorder %v1863_v8, %v1989_v60  ;;  %v435_v8 = vcvt.f32.s32 %v1935_v38  ;;  %v836_v46 = vsub.s32 %v833_v40, %v1997_v15 }
 0x23a   :  { %586 = vmin.xlane.f32.xlu1 %v585_v57  ;;  %v571_v55 = vsel %vm570_vm15, %v566_v63, inf  ;;  %v408_v32 = vshll.u32 %v407_v0, 16  ;;  %v815_v63 = vsub.s32 %v812_v11, %v1997_v15  ;;  %v2035_v0 = vshll.u32 %v561_v19, 16 }
 0x23b   :  { %572 = vmin.xlane.f32.xlu0 %v571_v55  ;;  %v436_v38 = vshll.u32 %v435_v8, 16  ;;  %v1449_v8 = vmov 1.0   ;;  %v2040_v2 = vshll.u32 %v547_v13, 16  ;;  %v840_v54 = vadd.s32 4294967248, %v1737_v18 }
 0x23c   :  { %v847_v11 = vadd.s32 4294967240, %v1737_v18  ;;  %v861_v19 = vadd.s32 4294967224, %v1737_v18  ;;  %v854_v40 = vadd.s32 4294967232, %v1737_v18  ;;  %vm852_vm12 = vcmask 523712  }
 0x23d   :  { %vm859_vm15 = vcmask 589312  }
 0x2ab   :  { %v391_v34 = vpop.xlane.xlu1 %390 }
 0x2ac   :  { %v392_v35 = vcvt.f32.s32 %v391_v34  ;;  %v377_v56 = vpop.xlane.xlu0 %376 }
 0x2ad   :  { %v378_v59 = vcvt.f32.s32 %v377_v56 }
 0x2ae   :  { %v395_v41 = vadd.s32 %v394_v51, %v392_v35  ;;  %v589_v51 = vcvt.f32.s32 %v1987_v24  ;;  %v575_v35 = vcvt.f32.s32 %v1989_v60 }
 0x2af   :  { %v419_v5 = vpop.xlane.xlu1 %418  ;;  %v381_v57 = vadd.s32 %v380_v20, %v378_v59 }
 0x2b0   :  { %v809_v55 = vrot.slane %v395_v41, %v808_v10  ;;  %v420_v61 = vcvt.f32.s32 %v419_v5  ;;  %v405_v58 = vpop.xlane.xlu0 %404  ;;  %vm593_vm3 = vcmp.eq.s32.totalorder %v1737_v18, %v395_v41  ;;  %v829_v10 = vsub.s32 %v826_v39, %v1997_v15 }
 0x2b1   :  { %v406_v21 = vcvt.f32.s32 %v405_v58  ;;  %vm592_vm1 = vcmp.eq.s32.totalorder %v1737_v18, %v381_v57  ;;  %v804_v42 = vrot.slane %v381_v57, %v803_v50  ;;  %v843_v5 = vsub.s32 %v840_v54, %v1997_v15 }
 0x2b2   :  { %v423_v6 = vadd.s32 %v422_v7, %v420_v61  ;;  %1355 = vmatprep.mubr.msk.f32.mxu1 %vm592_vm1, %v1449_v8  ;;  %v864_v39 = vsub.s32 %v861_v19, %v1997_v15  ;;  %v889_v54 = vadd.s32 4294967192, %v1737_v18 }
 0x2b3   :  { %v409_v3 = vadd.s32 %v408_v32, %v406_v21  ;;  %v811_v1 = vsel %vm810_vm0, %v809_v55, %v804_v42  ;;  %v447_v17 = vpop.xlane.xlu1 %446  ;;  %1356 = vmatmul.mubr.msk.f32.vlgmr.msra.gmra.mrb[0].mxu1 %vm593_vm3, %v1449_v8  ;;  %vm866_vm0 = vcmask 654912   ;;  %vm873_vm3 = vcmask 720512  }
 0x2b4   :  { %v448_v45 = vcvt.f32.s32 %v447_v17  ;;  %v433_v4 = vpop.xlane.xlu0 %432  ;;  %v823_v34 = vrot.slane %v423_v6, %v822_v47  ;;  %vm595_vm7 = vcmp.eq.s32.totalorder %v1737_v18, %v423_v6  ;;  %v868_v17 = vadd.s32 4294967216, %v1737_v18 }
 0x2b5   :  { %v816_v20 = vrot.slane %v409_v3, %v815_v63  ;;  %v434_v7 = vcvt.f32.s32 %v433_v4  ;;  %vm594_vm6 = vcmp.eq.s32.totalorder %v1737_v18, %v409_v3 }
 0x2b6   :  { %v451_v32 = vadd.s32 %v450_v28, %v448_v45  ;;  %1358 = vmatprep.mubr.msk.f32.mxu1 %vm594_vm6, %v1449_v8 }
 0x2b7   :  { %v818_v56 = vsel %vm817_vm2, %v816_v20, %v811_v1  ;;  %v437_v59 = vadd.s32 %v436_v38, %v434_v7  ;;  %v475_v50 = vpop.xlane.xlu1 %474  ;;  %1359 = vmatmul.mubr.msk.f32.gmra.mrb[2].mxu1 %vm595_vm7, %v1449_v8  ;;  %v850_v38 = vsub.s32 %v847_v11, %v1997_v15  ;;  %v882_v11 = vadd.s32 4294967200, %v1737_v18 }
 0x2b8   :  { %v825_v41 = vsel %vm824_vm4, %v823_v34, %v818_v56  ;;  %v476_v47 = vcvt.f32.s32 %v475_v50  ;;  %v461_v28 = vpop.xlane.xlu0 %460  ;;  %v837_v57 = vrot.slane %v451_v32, %v836_v46  ;;  %vm597_vm10 = vcmp.eq.s32.totalorder %v1737_v18, %v451_v32 }
 0x2b9   :  { %v830_v13 = vrot.slane %v437_v59, %v829_v10  ;;  %v462_v63 = vcvt.f32.s32 %v461_v28  ;;  %vm596_vm9 = vcmp.eq.s32.totalorder %v1737_v18, %v437_v59  ;;  %v875_v10 = vadd.s32 4294967208, %v1737_v18 }
 0x2ba   :  { %v479_v55 = vadd.s32 %v2012_v33, %v476_v47  ;;  %1361 = vmatprep.mubr.msk.f32.mxu1 %vm596_vm9, %v1449_v8  ;;  %v857_v33 = vsub.s32 %v854_v40, %v1997_v15  ;;  %v871_v59 = vsub.s32 %v868_v17, %v1997_v15  ;;  %v892_v40 = vsub.s32 %v889_v54, %v1997_v15 }
 0x2bb   :  { %v832_v61 = vsel %vm831_vm5, %v830_v13, %v825_v41  ;;  %v465_v58 = vadd.s32 %v2016_v25, %v462_v63  ;;  %v503_v21 = vpop.xlane.xlu1 %502  ;;  %1362 = vmatmul.mubr.msk.f32.gmra.mrb[4].mxu1 %vm597_vm10, %v1449_v8  ;;  %vm880_vm4 = vcmask 786112   ;;  %vm887_vm7 = vcmask 851712  }
 0x2bc   :  { %v839_v42 = vsel %vm838_vm8, %v837_v57, %v832_v61  ;;  %v504_v6 = vcvt.f32.s32 %v503_v21  ;;  %v489_v46 = vpop.xlane.xlu0 %488  ;;  %v851_v45 = vrot.slane %v479_v55, %v850_v38  ;;  %vm599_vm14 = vcmp.eq.s32.totalorder %v1737_v18, %v479_v55 }
 0x2bd   :  { %v844_v3 = vrot.slane %v465_v58, %v843_v5  ;;  %v490_v1 = vcvt.f32.s32 %v489_v46  ;;  %vm598_vm13 = vcmp.eq.s32.totalorder %v1737_v18, %v465_v58  ;;  %v896_v61 = vadd.s32 4294967184, %v1737_v18 }
 0x2be   :  { %v507_v25 = vadd.s32 %v2018_v62, %v504_v6  ;;  %1364 = vmatprep.mubr.msk.f32.mxu1 %vm598_vm13, %v1449_v8  ;;  %v590_v21 = vshll.u32 %v589_v51, 16  ;;  %vm894_vm8 = vcmask 917312  }
 0x2bf   :  { %v846_v4 = vsel %vm845_vm11, %v844_v3, %v839_v42  ;;  %v493_v20 = vadd.s32 %v2020_v31, %v490_v1  ;;  %v531_v7 = vpop.xlane.xlu1 %530  ;;  %1365 = vmatmul.mubr.msk.f32.gmra.mrb[6].mxu1 %vm599_vm14, %v1449_v8  ;;  %v878_v31 = vsub.s32 %v875_v10, %v1997_v15  ;;  %v576_v42 = vshll.u32 %v575_v35, 16 }
 0x2c0   :  { %v853_v34 = vsel %vm852_vm12, %v851_v45, %v846_v4  ;;  %v532_v32 = vcvt.f32.s32 %v531_v7  ;;  %v517_v62 = vpop.xlane.xlu0 %516  ;;  %v865_v19 = vrot.slane %v507_v25, %v864_v39  ;;  %vm601_vm2 = vcmp.eq.s32.totalorder %v1737_v18, %v507_v25 }
 0x2c1   :  { %v858_v56 = vrot.slane %v493_v20, %v857_v33  ;;  %v518_v50 = vcvt.f32.s32 %v517_v62  ;;  %vm600_vm1 = vcmp.eq.s32.totalorder %v1737_v18, %v493_v20  ;;  %v903_v39 = vadd.s32 4294967176, %v1737_v18 }
 0x2c2   :  { %v535_v41 = vadd.s32 %v2022_v26, %v532_v32  ;;  %1367 = vmatprep.mubr.msk.f32.mxu1 %vm600_vm1, %v1449_v8  ;;  %v885_v26 = vsub.s32 %v882_v11, %v1997_v15  ;;  %v899_v24 = vsub.s32 %v896_v61, %v1997_v15  ;;  %vm901_vm11 = vcmask 982912  }
 0x2c3   :  { %v860_v47 = vsel %vm859_vm15, %v858_v56, %v853_v34  ;;  %v521_v28 = vadd.s32 %v2029_v27, %v518_v50  ;;  %v559_v13 = vpop.xlane.xlu1 %558  ;;  %1368 = vmatmul.mubr.msk.f32.gmra.mrb[8].mxu1 %vm601_vm2, %v1449_v8  ;;  %v906_v35 = vsub.s32 %v903_v39, %v1997_v15  ;;  %vm908_vm12 = vcmask 1048512  }
 0x2c4   :  { %v867_v5 = vsel %vm866_vm0, %v865_v19, %v860_v47  ;;  %v560_v63 = vcvt.f32.s32 %v559_v13  ;;  %v545_v57 = vpop.xlane.xlu0 %544  ;;  %v879_v58 = vrot.slane %v535_v41, %v878_v31  ;;  %vm603_vm6 = vcmp.eq.s32.totalorder %v1737_v18, %v535_v41 }
 0x2c5   :  { %v872_v38 = vrot.slane %v521_v28, %v871_v59  ;;  %v546_v55 = vcvt.f32.s32 %v545_v57  ;;  %vm602_vm5 = vcmp.eq.s32.totalorder %v1737_v18, %v521_v28 }
 0x2c6   :  { %v563_v27 = vadd.s32 %v2035_v0, %v560_v63  ;;  %1370 = vmatprep.mubr.msk.f32.mxu1 %vm602_vm5, %v1449_v8 }
 0x2c7   :  { %v874_v6 = vsel %vm873_vm3, %v872_v38, %v867_v5  ;;  %v549_v33 = vadd.s32 %v2040_v2, %v546_v55  ;;  %v587_v46 = vpop.xlane.xlu1 %586  ;;  %1371 = vmatmul.mubr.msk.f32.gmra.mrb[10].mxu1 %vm603_vm6, %v1449_v8 }
 0x2c8   :  { %v881_v0 = vsel %vm880_vm4, %v879_v58, %v874_v6  ;;  %v588_v3 = vcvt.f32.s32 %v587_v46  ;;  %v573_v1 = vpop.xlane.xlu0 %572  ;;  %v893_v60 = vrot.slane %v563_v27, %v892_v40  ;;  %vm605_vm10 = vcmp.eq.s32.totalorder %v1737_v18, %v563_v27 }
 0x2c9   :  { %v886_v17 = vrot.slane %v549_v33, %v885_v26  ;;  %v574_v51 = vcvt.f32.s32 %v573_v1  ;;  %vm604_vm9 = vcmp.eq.s32.totalorder %v1737_v18, %v549_v33 }
 0x2ca   :  { %v591_v45 = vadd.s32 %v590_v21, %v588_v3  ;;  %1373 = vmatprep.mubr.msk.f32.mxu1 %vm604_vm9, %v1449_v8 }
 0x2cb   :  { %v888_v2 = vsel %vm887_vm7, %v886_v17, %v881_v0  ;;  %v577_v25 = vadd.s32 %v576_v42, %v574_v51  ;;  %1374 = vmatmul.mubr.msk.f32.gmra.mrb[12].mxu1 %vm605_vm10, %v1449_v8 }
 0x2cc   :  { %v895_v10 = vsel %vm894_vm8, %v893_v60, %v888_v2  ;;  %v907_v20 = vrot.slane %v591_v45, %v906_v35  ;;  %vm607_vm14 = vcmp.eq.s32.totalorder %v1737_v18, %v591_v45 }
 0x2cd   :  { %v900_v4 = vrot.slane %v577_v25, %v899_v24  ;;  %vm606_vm13 = vcmp.eq.s32.totalorder %v1737_v18, %v577_v25 }
 0x2ce   :  { %1376 = vmatprep.mubr.msk.f32.mxu1 %vm606_vm13, %v1449_v8 }
 0x2cf   :  { %v902_v7 = vsel %vm901_vm11, %v900_v4, %v895_v10  ;;  %1377 = vmatmul.mubr.msk.f32.gmra.mrb[14].mxu1 %vm607_vm14, %v1449_v8 }
 0x2d0   :  { %v909_v54 = vsel %vm908_vm12, %v907_v20, %v902_v7 }
 0x2d1   :  { %910 = vst [vmem:[%s2350_s6] sm:$0x1] %v909_v54 }
 0x386   :  { %v2119_v34 = vpop.f32.mrb[0].mxu1 }
 0x387   :  { %786 = vst [vmem:[%s2351_s5 + $0x8] sm:$0xff] %v2119_v34  ;;  %v2125_v32 = vpop.f32.mrb[1].mxu1  ;;  %v919_v63 = vsub.f32 (!%p1184_p0), %v2119_v34, %v1531_v14 }
 0x388   :  { %785 = vst [vmem:[%s2351_s5] sm:$0xff] %v2125_v32  ;;  %v918_v5 = vsub.f32 (!%p1184_p0), %v2125_v32, %v1512_v9 }
 0x389   :  { %v935_v55 = vmul.f32 (!%p1184_p0), %v919_v63, %v919_v63 }
 0x38a   :  { %v2131_v18 = vpop.f32.mrb[2].mxu1  ;;  %v934_v38 = vmul.f32 (!%p1184_p0), %v918_v5, %v918_v5 }
 0x38b   :  { %788 = vst [vmem:[%s2351_s5 + $0x18] sm:$0xff] %v2131_v18  ;;  %v2137_v8 = vpop.f32.mrb[3].mxu1  ;;  %v921_v57 = vsub.f32 (!%p1184_p0), %v2131_v18, %v1538_v16 }
 0x38c   :  { %787 = vst [vmem:[%s2351_s5 + $0x10] sm:$0xff] %v2137_v8  ;;  %v920_v26 = vsub.f32 (!%p1184_p0), %v2137_v8, %v1524_v12  ;;  %v950_v21 = vadd.f32 (!%p1184_p0), %v935_v55, %v934_v38 }
 0x38d   :  { %v937_v39 = vmul.f32 (!%p1184_p0), %v921_v57, %v921_v57 }
 0x38e   :  { %v2143_v62 = vpop.f32.mrb[4].mxu1  ;;  %v936_v58 = vmul.f32 (!%p1184_p0), %v920_v26, %v920_v26 }
 0x38f   :  { %790 = vst [vmem:[%s2351_s5 + $0x28] sm:$0xff] %v2143_v62  ;;  %v2149_v11 = vpop.f32.mrb[5].mxu1  ;;  %v923_v27 = vsub.f32 (!%p1184_p0), %v2143_v62, %v1558_v23 }
 0x390   :  { %789 = vst [vmem:[%s2351_s5 + $0x20] sm:$0xff] %v2149_v11  ;;  %v922_v61 = vsub.f32 (!%p1184_p0), %v2149_v11, %v1553_v22  ;;  %v951_v33 = vadd.f32 (!%p1184_p0), %v950_v21, %v936_v58 }
 0x391   :  { %v939_v0 = vmul.f32 (!%p1184_p0), %v923_v27, %v923_v27 }
 0x392   :  { %v2155_v56 = vpop.f32.mrb[6].mxu1  ;;  %v938_v6 = vmul.f32 (!%p1184_p0), %v922_v61, %v922_v61  ;;  %v952_v3 = vadd.f32 (!%p1184_p0), %v951_v33, %v937_v39 }
 0x393   :  { %792 = vst [vmem:[%s2351_s5 + $0x38] sm:$0xff] %v2155_v56  ;;  %v2161_v59 = vpop.f32.mrb[7].mxu1  ;;  %v925_v46 = vsub.f32 (!%p1184_p0), %v2155_v56, %v1578_v30 }
 0x394   :  { %791 = vst [vmem:[%s2351_s5 + $0x30] sm:$0xff] %v2161_v59  ;;  %v924_v42 = vsub.f32 (!%p1184_p0), %v2161_v59, %v1573_v29  ;;  %v953_v24 = vadd.f32 (!%p1184_p0), %v952_v3, %v938_v6 }
 0x395   :  { %v941_v60 = vmul.f32 (!%p1184_p0), %v925_v46, %v925_v46 }
 0x396   :  { %v2167_v50 = vpop.f32.mrb[8].mxu1  ;;  %v940_v17 = vmul.f32 (!%p1184_p0), %v924_v42, %v924_v42  ;;  %v954_v35 = vadd.f32 (!%p1184_p0), %v953_v24, %v939_v0 }
 0x397   :  { %794 = vst [vmem:[%s2351_s5 + $0x48] sm:$0xff] %v2167_v50  ;;  %v2173_v19 = vpop.f32.mrb[9].mxu1  ;;  %v927_v51 = vsub.f32 (!%p1184_p0), %v2167_v50, %v1598_v37 }
 0x398   :  { %793 = vst [vmem:[%s2351_s5 + $0x40] sm:$0xff] %v2173_v19  ;;  %v926_v1 = vsub.f32 (!%p1184_p0), %v2173_v19, %v1593_v36  ;;  %v955_v25 = vadd.f32 (!%p1184_p0), %v954_v35, %v940_v17 }
 0x399   :  { %v943_v4 = vmul.f32 (!%p1184_p0), %v927_v51, %v927_v51 }
 0x39a   :  { %v2179_v31 = vpop.f32.mrb[10].mxu1  ;;  %v942_v2 = vmul.f32 (!%p1184_p0), %v926_v1, %v926_v1  ;;  %v956_v20 = vadd.f32 (!%p1184_p0), %v955_v25, %v941_v60 }
 0x39b   :  { %796 = vst [vmem:[%s2351_s5 + $0x58] sm:$0xff] %v2179_v31  ;;  %v2185_v41 = vpop.f32.mrb[11].mxu1  ;;  %v929_v10 = vsub.f32 (!%p1184_p0), %v2179_v31, %v1618_v44 }
 0x39c   :  { %795 = vst [vmem:[%s2351_s5 + $0x50] sm:$0xff] %v2185_v41  ;;  %v928_v45 = vsub.f32 (!%p1184_p0), %v2185_v41, %v1613_v43  ;;  %v957_v5 = vadd.f32 (!%p1184_p0), %v956_v20, %v942_v2 }
 0x39d   :  { %v945_v26 = vmul.f32 (!%p1184_p0), %v929_v10, %v929_v10 }
 0x39e   :  { %v2191_v47 = vpop.f32.mrb[12].mxu1  ;;  %917 = sbr.rel (%p1184_p0) target bundleno = 1146 (0x47a), region = 21  ;;  %v944_v54 = vmul.f32 (!%p1184_p0), %v928_v45, %v928_v45  ;;  %v958_v57 = vadd.f32 (!%p1184_p0), %v957_v5, %v943_v4 }
 0x39f   :  { %798 = vst [vmem:[%s2351_s5 + $0x68] sm:$0xff] %v2191_v47  ;;  %v2197_v28 = vpop.f32.mrb[13].mxu1  ;;  %v931_v63 = vsub.f32 (!%p1184_p0), %v2191_v47, %v1632_v49 }
 0x3a0   :  { %797 = vst [vmem:[%s2351_s5 + $0x60] sm:$0xff] %v2197_v28  ;;  %v930_v7 = vsub.f32 (!%p1184_p0), %v2197_v28, %v1627_v48  ;;  %v959_v61 = vadd.f32 (!%p1184_p0), %v958_v57, %v944_v54 }
 0x3a1   :  { %v947_v27 = vmul.f32 (!%p1184_p0), %v931_v63, %v931_v63 }
 0x3a2   :  { %v2203_v40 = vpop.f32.mrb[14].mxu1  ;;  %v946_v55 = vmul.f32 (!%p1184_p0), %v930_v7, %v930_v7  ;;  %v960_v39 = vadd.f32 (!%p1184_p0), %v959_v61, %v945_v26 }
 0x3a3   :  { %800 = vst [vmem:[%s2351_s5 + $0x78] sm:$0xff] %v2203_v40  ;;  %v2209_v13 = vpop.f32.mrb[15].mxu1  ;;  %v933_v58 = vsub.f32 (!%p1184_p0), %v2203_v40, %v1646_v53 }
 0x3a4   :  { %799 = vst [vmem:[%s2351_s5 + $0x70] sm:$0xff] %v2209_v13  ;;  %v932_v38 = vsub.f32 (!%p1184_p0), %v2209_v13, %v1641_v52  ;;  %v961_v42 = vadd.f32 (!%p1184_p0), %v960_v39, %v946_v55 }
 0x3a5   :  { %v949_v6 = vmul.f32 %v933_v58, %v933_v58 }
 0x3a6   :  { %v948_v21 = vmul.f32 %v932_v38, %v932_v38  ;;  %v962_v33 = vadd.f32 %v961_v42, %v947_v27 }
 0x3a8   :  { %v963_v46 = vadd.f32 %v962_v33, %v948_v21 }
 0x3aa   :  { %v964_v0 = vadd.f32 %v963_v46, %v949_v6 }
 0x3ac   :  { %965 = vadd.xlane.f32.xlu0 %v964_v0 }
 0x439   :  { %v966_v3 = vpop.xlane.xlu0 %965 }
 0x43a   :  { %v967_v1 = vrot.slane %v966_v3, 4 }
 0x43c   :  { %v968_v17 = vadd.f32 %v967_v1, %v966_v3 }
 0x43e   :  { %v969_v24 = vrot.slane %v968_v17, 2 }
 0x440   :  { %v970_v51 = vadd.f32 %v969_v24, %v968_v17 }
 0x442   :  { %v971_v60 = vrot.slane %v970_v51, 1 }
 0x444   :  { %v972_v35 = vadd.f32 %v971_v60, %v970_v51 }
 0x446   :  { %1443 = vpush %v972_v35 }
 0x477   :  { %s1444_s5 = spop %1443 }
 0x478   :  { %v974_v45 = vstv %s1444_s5 }
 0x479   :  { %975 = vst [vmem:[%s2346_s7] sm:$0x1] %v974_v45 }
 0x47a PF:  { %p1186_p1 = scmp.ge.s32.totalorder %s2344_s0, 128 }
 0x47b   :  { %v983_v2 = vadd.s32 (!%p1186_p1), 8, %v1997_v15  ;;  %v2260_v25 = vstv (!%p1186_p1), %s2344_s0  ;;  %v984_v10 = vadd.s32 (!%p1186_p1), 16, %v1997_v15  ;;  %v985_v4 = vadd.s32 (!%p1186_p1), 24, %v1997_v15 }
 0x47c   :  { %979 = sbr.rel (%p1186_p1) target bundleno = 1394 (0x572), region = 25  ;;  %vm1032_vm15 = vcmp.lt.s32.totalorder (!%p1186_p1), %v1997_v15, %v2260_v25  ;;  %v986_v20 = vadd.s32 (!%p1186_p1), 32, %v1997_v15  ;;  %v1015_v7 = vsub.f32 (!%p1186_p1), %v2125_v32, %v1512_v9  ;;  %v1016_v54 = vsub.f32 (!%p1186_p1), %v2119_v34, %v1531_v14 }
 0x47d   :  { %vm1033_vm0 = vcmp.lt.s32.totalorder (!%p1186_p1), %v983_v2, %v2260_v25  ;;  %vm1034_vm1 = vcmp.lt.s32.totalorder (!%p1186_p1), %v984_v10, %v2260_v25  ;;  %v1450_v5 = vmov (!%p1186_p1), 0.0   ;;  %v987_v57 = vadd.s32 (!%p1186_p1), 40, %v1997_v15 }
 0x47e   :  { %v1187_v63 = vsel (!%p1186_p1), %vm1032_vm15, 1.0, %v1450_v5  ;;  %v1188_v26 = vsel (!%p1186_p1), %vm1033_vm0, 1.0, %v1450_v5  ;;  %v1017_v38 = vsub.f32 (!%p1186_p1), %v2137_v8, %v1524_v12  ;;  %vm1035_vm2 = vcmp.lt.s32.totalorder (!%p1186_p1), %v985_v4, %v2260_v25 }
 0x47f   :  { %v988_v55 = vadd.s32 (!%p1186_p1), 48, %v1997_v15  ;;  %v1189_v9 = vsel (!%p1186_p1), %vm1034_vm1, 1.0, %v1450_v5  ;;  %v1018_v14 = vsub.f32 (!%p1186_p1), %v2131_v18, %v1538_v16  ;;  %vm1036_vm3 = vcmp.lt.s32.totalorder (!%p1186_p1), %v986_v20, %v2260_v25 }
 0x480   :  { %v1080_v34 = vmul.f32 (!%p1186_p1), %v1187_v63, %v1015_v7  ;;  %v1081_v32 = vmul.f32 (!%p1186_p1), %v1188_v26, %v1016_v54  ;;  %v1190_v61 = vsel (!%p1186_p1), %vm1035_vm2, 1.0, %v1450_v5  ;;  %v989_v58 = vadd.s32 (!%p1186_p1), 56, %v1997_v15 }
 0x481   :  { %v1019_v12 = vsub.f32 (!%p1186_p1), %v2149_v11, %v1553_v22  ;;  %vm1037_vm4 = vcmp.lt.s32.totalorder (!%p1186_p1), %v987_v57, %v2260_v25  ;;  %v1082_v8 = vmul.f32 (!%p1186_p1), %v1189_v9, %v1017_v38  ;;  %v990_v27 = vadd.s32 (!%p1186_p1), 64, %v1997_v15 }
 0x482   :  { %v1020_v39 = vsub.f32 (!%p1186_p1), %v2143_v62, %v1558_v23  ;;  %v1191_v16 = vsel (!%p1186_p1), %vm1036_vm3, 1.0, %v1450_v5  ;;  %vm1038_vm5 = vcmp.lt.s32.totalorder (!%p1186_p1), %v988_v55, %v2260_v25  ;;  %v1083_v18 = vmul.f32 (!%p1186_p1), %v1190_v61, %v1018_v14 }
 0x483   :  { %v1096_v21 = vmul.f32 %v1080_v34, %v1080_v34  ;;  %v1097_v42 = vmul.f32 %v1081_v32, %v1081_v32  ;;  %v991_v6 = vadd.s32 72, %v1997_v15  ;;  %v1192_v33 = vsel %vm1037_vm4, 1.0, %v1450_v5 }
 0x484   :  { %v1021_v22 = vsub.f32 %v2161_v59, %v1573_v29  ;;  %vm1039_vm6 = vcmp.lt.s32.totalorder %v989_v58, %v2260_v25  ;;  %v1084_v11 = vmul.f32 %v1191_v16, %v1019_v12  ;;  %v1098_v46 = vmul.f32 %v1082_v8, %v1082_v8 }
 0x485   :  { %v992_v23 = vadd.s32 80, %v1997_v15  ;;  %v1022_v62 = vsub.f32 %v2155_v56, %v1578_v30  ;;  %v1193_v0 = vsel %vm1038_vm5, 1.0, %v1450_v5  ;;  %vm1040_vm7 = vcmp.lt.s32.totalorder %v990_v27, %v2260_v25 }
 0x486   :  { %v1085_v3 = vmul.f32 %v1192_v33, %v1020_v39  ;;  %v1099_v1 = vmul.f32 %v1083_v18, %v1083_v18  ;;  %v1112_v17 = vadd.f32 %v1097_v42, %v1096_v21  ;;  %v993_v24 = vadd.s32 88, %v1997_v15 }
 0x487   :  { %v1023_v29 = vsub.f32 %v2173_v19, %v1593_v36  ;;  %v1194_v59 = vsel %vm1039_vm6, 1.0, %v1450_v5  ;;  %vm1041_vm8 = vcmp.lt.s32.totalorder %v991_v6, %v2260_v25  ;;  %v1086_v51 = vmul.f32 %v1193_v0, %v1021_v22 }
 0x488   :  { %v1100_v60 = vmul.f32 %v1084_v11, %v1084_v11  ;;  %v1113_v35 = vadd.f32 %v1112_v17, %v1098_v46  ;;  %v994_v30 = vadd.s32 96, %v1997_v15  ;;  %v1024_v56 = vsub.f32 %v2167_v50, %v1598_v37 }
 0x489   :  { %v1195_v45 = vsel %vm1040_vm7, 1.0, %v1450_v5  ;;  %vm1042_vm9 = vcmp.lt.s32.totalorder %v992_v23, %v2260_v25  ;;  %v1087_v2 = vmul.f32 %v1194_v59, %v1022_v62  ;;  %v1101_v10 = vmul.f32 %v1085_v3, %v1085_v3 }
 0x48a   :  { %v1114_v4 = vadd.f32 %v1113_v35, %v1099_v1  ;;  %v995_v36 = vadd.s32 104, %v1997_v15  ;;  %v1025_v19 = vsub.f32 %v2185_v41, %v1613_v43  ;;  %v1196_v20 = vsel %vm1041_vm8, 1.0, %v1450_v5 }
 0x48b   :  { %vm1043_vm10 = vcmp.lt.s32.totalorder %v993_v24, %v2260_v25  ;;  %v1088_v7 = vmul.f32 %v1195_v45, %v1023_v29  ;;  %v1102_v54 = vmul.f32 %v1086_v51, %v1086_v51  ;;  %v996_v37 = vadd.s32 112, %v1997_v15 }
 0x48c   :  { %v1115_v63 = vadd.f32 %v1114_v4, %v1100_v60  ;;  %v1026_v50 = vsub.f32 %v2179_v31, %v1618_v44  ;;  %v1197_v26 = vsel %vm1042_vm9, 1.0, %v1450_v5  ;;  %vm1044_vm11 = vcmp.lt.s32.totalorder %v994_v30, %v2260_v25 }
 0x48d   :  { %v1089_v57 = vmul.f32 %v1196_v20, %v1024_v56  ;;  %v1103_v38 = vmul.f32 %v1087_v2, %v1087_v2  ;;  %v997_v43 = vadd.s32 120, %v1997_v15  ;;  %v1027_v41 = vsub.f32 %v2197_v28, %v1627_v48 }
 0x48e   :  { %v1116_v55 = vadd.f32 %v1115_v63, %v1101_v10  ;;  %v1198_v9 = vsel %vm1043_vm10, 1.0, %v1450_v5  ;;  %vm1045_vm12 = vcmp.lt.s32.totalorder %v995_v36, %v2260_v25  ;;  %v1090_v14 = vmul.f32 %v1197_v26, %v1025_v19 }
 0x48f   :  { %v1104_v34 = vmul.f32 %v1088_v7, %v1088_v7  ;;  %v1028_v44 = vsub.f32 %v2191_v47, %v1632_v49  ;;  %v1199_v31 = vsel %vm1044_vm11, 1.0, %v1450_v5  ;;  %vm1046_vm13 = vcmp.lt.s32.totalorder %v996_v37, %v2260_v25 }
 0x490   :  { %v1117_v32 = vadd.f32 %v1116_v55, %v1102_v54  ;;  %v1091_v61 = vmul.f32 %v1198_v9, %v1026_v50  ;;  %v1105_v58 = vmul.f32 %v1089_v57, %v1089_v57  ;;  %v1029_v48 = vsub.f32 %v2209_v13, %v1641_v52 }
 0x491   :  { %v1200_v28 = vsel %vm1045_vm12, 1.0, %v1450_v5  ;;  %vm1047_vm14 = vcmp.lt.s32.totalorder %v997_v43, %v2260_v25  ;;  %v1092_v12 = vmul.f32 %v1199_v31, %v1027_v41  ;;  %v1106_v8 = vmul.f32 %v1090_v14, %v1090_v14 }
 0x492   :  { %v1118_v15 = vadd.f32 %v1117_v32, %v1103_v38  ;;  %v1201_v39 = vsel %vm1046_vm13, 1.0, %v1450_v5  ;;  %v1030_v49 = vsub.f32 %v2203_v40, %v1646_v53  ;;  %v1093_v47 = vmul.f32 %v1200_v28, %v1028_v44 }
 0x493   :  { %v1107_v16 = vmul.f32 %v1091_v61, %v1091_v61  ;;  %v1202_v21 = vsel %vm1047_vm14, 1.0, %v1450_v5  ;;  %v1094_v42 = vmul.f32 %v1201_v39, %v1029_v48  ;;  %v1108_v6 = vmul.f32 %v1092_v12, %v1092_v12 }
 0x494   :  { %v1119_v27 = vadd.f32 %v1118_v15, %v1104_v34  ;;  %v1095_v13 = vmul.f32 %v1202_v21, %v1030_v49  ;;  %v1109_v33 = vmul.f32 %v1093_v47, %v1093_v47 }
 0x495   :  { %v1110_v25 = vmul.f32 %v1094_v42, %v1094_v42 }
 0x496   :  { %v1120_v18 = vadd.f32 %v1119_v27, %v1105_v58  ;;  %v1111_v46 = vmul.f32 %v1095_v13, %v1095_v13 }
 0x498   :  { %v1121_v52 = vadd.f32 %v1120_v18, %v1106_v8 }
 0x49a   :  { %v1122_v22 = vadd.f32 %v1121_v52, %v1107_v16 }
 0x49c   :  { %v1123_v11 = vadd.f32 %v1122_v22, %v1108_v6 }
 0x49e   :  { %v1124_v23 = vadd.f32 %v1123_v11, %v1109_v33 }
 0x4a0   :  { %v1125_v62 = vadd.f32 %v1124_v23, %v1110_v25 }
 0x4a2   :  { %v1126_v0 = vadd.f32 %v1125_v62, %v1111_v46 }
 0x4a4   :  { %1127 = vadd.xlane.f32.xlu0 %v1126_v0 }
 0x531   :  { %v1128_v3 = vpop.xlane.xlu0 %1127 }
 0x532   :  { %v1129_v53 = vrot.slane %v1128_v3, 4 }
 0x534   :  { %v1130_v40 = vadd.f32 %v1129_v53, %v1128_v3 }
 0x536   :  { %v1131_v1 = vrot.slane %v1130_v40, 2 }
 0x538   :  { %v1132_v17 = vadd.f32 %v1131_v1, %v1130_v40 }
 0x53a   :  { %v1133_v24 = vrot.slane %v1132_v17, 1 }
 0x53c   :  { %v1134_v5 = vadd.f32 %v1133_v24, %v1132_v17 }
 0x53e   :  { %1445 = vpush %v1134_v5 }
 0x56f   :  { %s1446_s0 = spop %1445 }
 0x570   :  { %v1136_v29 = vstv %s1446_s0 }
 0x571   :  { %1137 = vst [vmem:[%s2346_s7] sm:$0x1] %v1136_v29 }
 0x572 PF:  {}

</bundles_post_ra>
